<compile_context>
chip_gen: v5e
topology: v5e:2x2
jax: 0.10.0
libtpu: 0.0.40
codegen_flags: <defaults>
</compile_context>

<pallas_src>
import jax
import jax.numpy as jnp
from jax import lax
from jax.experimental import pallas as pl
from jax.experimental.pallas import tpu as pltpu


def _mah_kernel(emb_ref, x_ref, mean_ref, p_ref, out_ref):
    # emb_ref : (C, K)       f32, SMEM  (scalar coefficients)
    # x_ref   : (C, N, TS)   storage dtype, VMEM; pixel axis TS is the lane axis
    # mean_ref: (K, TS)      storage dtype
    # p_ref   : (K, K, TS)   storage dtype
    # out_ref : (N, TS)      f32
    C, N, TS = x_ref.shape
    K = mean_ref.shape[0]

    # Projection + per-pixel mean subtraction as unrolled VPU FMAs over
    # lane-dense (N, TS) vectors:  M[k] = sum_c x[c] * emb[c, k] - mean[k]
    M = []
    for k in range(K):
        acc = x_ref[0].astype(jnp.float32) * emb_ref[0, k]
        for c in range(1, C):
            acc = acc + x_ref[c].astype(jnp.float32) * emb_ref[c, k]
        M.append(acc - mean_ref[k:k + 1, :].astype(jnp.float32))

    # Quadratic form R = sum_{m,k} M[m] * P[m, k] * M[k], all lane-dense FMAs.
    R = None
    for m in range(K):
        t = M[0] * p_ref[m, 0:1, :].astype(jnp.float32)
        for k in range(1, K):
            t = t + M[k] * p_ref[m, k:k + 1, :].astype(jnp.float32)
        contrib = M[m] * t
        R = contrib if R is None else R + contrib

    out_ref[...] = jnp.sqrt(jnp.abs(R))


def mah_forward_pallas(x_nchw, emb, mean_hwk, P_hwkk, tile_s=512,
                       storage_dtype=jnp.bfloat16):
    N, C, H, Wd = x_nchw.shape
    K = emb.shape[1]
    S = H * Wd

    # Lane tile: multiple of 128, no larger than (128-rounded) S.
    tile = min(tile_s, pl.cdiv(S, 128) * 128)
    tile = max(128, (tile // 128) * 128)
    S_pad = pl.cdiv(S, tile) * tile

    # Glue: NCHW -> pixel-minor (S last) layout, bf16 storage in HBM.
    x_f = jnp.transpose(x_nchw, (1, 0, 2, 3)).reshape(C, N, S).astype(storage_dtype)
    mean_f = jnp.transpose(mean_hwk, (2, 0, 1)).reshape(K, S).astype(storage_dtype)
    P_f = jnp.transpose(P_hwkk, (2, 3, 0, 1)).reshape(K, K, S).astype(storage_dtype)
    emb_f = emb.astype(jnp.float32)

    if S_pad != S:
        pad = S_pad - S
        # Zero padding is safe: padded pixels give M = 0 -> R = 0 (no NaNs).
        x_f = jnp.pad(x_f, ((0, 0), (0, 0), (0, pad)))
        mean_f = jnp.pad(mean_f, ((0, 0), (0, pad)))
        P_f = jnp.pad(P_f, ((0, 0), (0, 0), (0, pad)))

    # Explicit VMEM budget: ~2x-buffered blocks + headroom, capped well below
    # v7x's 64 MiB physical VMEM (trivially fine on v5e/v6e's 128 MiB).
    block_bytes = (C * N + K * K + K + N) * tile * 4
    vmem_limit = int(min(48 * 1024 * 1024, max(32 * 1024 * 1024, 4 * block_bytes)))

    out_f = pl.pallas_call(
        _mah_kernel,
        out_shape=jax.ShapeDtypeStruct((N, S_pad), jnp.float32),
        grid_spec=pltpu.PrefetchScalarGridSpec(
            num_scalar_prefetch=0,
            grid=(S_pad // tile,),
            in_specs=[
                # tiny (C, K) embedding: SMEM, read as scalars in the kernel
                pl.BlockSpec(memory_space=pltpu.MemorySpace.SMEM),
                # NOTE: if DMA is still exposed after the compute restructuring,
                # add pipeline_mode=pl.Buffered(3) to the x / P specs below.
                pl.BlockSpec((C, N, tile), lambda i: (0, 0, i)),
                pl.BlockSpec((K, tile), lambda i: (0, i)),
                pl.BlockSpec((K, K, tile), lambda i: (0, 0, i)),
            ],
            out_specs=pl.BlockSpec((N, tile), lambda i: (0, i)),
        ),
        compiler_params=pltpu.CompilerParams(
            dimension_semantics=("parallel",),
            vmem_limit_bytes=vmem_limit,
        ),
    )(emb_f, x_f, mean_f, P_f)

    # Glue: pixel-minor -> (N, 1, H, W), matching the PyTorch return.
    R = out_f[:, :S].reshape(N, H, Wd)[:, None, :, :]
    return [R]


def mah_forward_ref(x_nchw, emb, mean_hwk, P_hwkk):
    hp = lax.Precision.HIGHEST
    y = jnp.einsum('nchw,ck->nkhw', x_nchw, emb, precision=hp)
    m = jnp.transpose(mean_hwk, (2, 0, 1))[None]   # (1, K, H, W)
    M = y - m
    R = jnp.einsum('nmhw,hwmk,nkhw->nhw', M, P_hwkk, M, precision=hp)
    return jnp.sqrt(jnp.abs(R))[:, None]


if __name__ == "__main__":
    key = jax.random.PRNGKey(0)
    N, C, K, H, Wd = 2, 8, 4, 30, 30     # S = 900 -> exercises tiling + padding
    eps = 0.01
    k_x, k_mean, k_cov, k_emb = jax.random.split(key, 4)

    # input activation (NCHW, like the PyTorch x[0])
    x = jax.random.normal(k_x, (N, C, H, Wd), dtype=jnp.float32)

    # per-pixel mean in projected space: (H, W, K)
    mean = jax.random.normal(k_mean, (H, Wd, K), dtype=jnp.float32)

    # per-pixel covariance (H, W, K, K), symmetric PD; build precision matrix
    # (MahEvaluator.build() for method='ortho': inv(cov + eps*I)) - glue.
    A = jax.random.normal(k_cov, (H, Wd, K, K), dtype=jnp.float32)
    cov = jnp.einsum('hwij,hwkj->hwik', A, A) / K + 0.1 * jnp.eye(K)
    P = jnp.linalg.inv(cov + eps * jnp.eye(K))

    # 'ortho' embedding (C, K): orthonormal columns, deterministic
    # TODO(synk): nn.init.orthogonal_ RNG not reproduced bit-exactly; QR of a
    # deterministic gaussian gives an equivalent orthonormal embedding.
    Q, _ = jnp.linalg.qr(jax.random.normal(k_emb, (C, C), dtype=jnp.float32))
    emb = Q[:, :K]

    # Pre-round the bulky per-pixel tensors to bf16 (the kernel's HBM storage
    # dtype) so the f32 reference is computed on identical values.
    x = x.astype(jnp.bfloat16).astype(jnp.float32)
    mean = mean.astype(jnp.bfloat16).astype(jnp.float32)
    P = P.astype(jnp.bfloat16).astype(jnp.float32)

    out = mah_forward_pallas(x, emb, mean, P, tile_s=512)
    out0 = jax.block_until_ready(out[0])

    ref = mah_forward_ref(x, emb, mean, P)
    assert out0.shape == (N, 1, H, Wd)
    assert jnp.allclose(out0, ref, rtol=1e-3, atol=1e-3)
    print("KERNEL_OK")
</pallas_src>

<mosaic_0001>
module attributes {stable_mosaic.version = 11 : i64} {
  func.func @_mah_kernel(%arg0: i32, %arg1: memref<8x4xf32, #tpu.memory_space<smem>>, %arg2: memref<8x2x512xbf16, #tpu.memory_space<vmem>>, %arg3: memref<4x512xbf16, #tpu.memory_space<vmem>>, %arg4: memref<4x4x512xbf16, #tpu.memory_space<vmem>>, %arg5: memref<2x512xf32, #tpu.memory_space<vmem>>) attributes {dimension_semantics = [#tpu.dimension_semantics<parallel>], iteration_bounds = array<i64: 2>, scalar_prefetch = 0 : i64, scratch_operands = 0 : i64, tpu.core_type = #tpu.core_type<tc>, window_params = [{transform_indices = @transform_0, window_bounds = array<i64: 8, 4>}, {transform_indices = @transform_1, window_bounds = array<i64: 8, 2, 512>}, {transform_indices = @transform_2, window_bounds = array<i64: 4, 512>}, {transform_indices = @transform_3, window_bounds = array<i64: 4, 4, 512>}, {transform_indices = @transform_4, window_bounds = array<i64: 2, 512>}]} {
    %c0 = arith.constant 0 : index
    %c0_0 = arith.constant 0 : index
    %c0_1 = arith.constant 0 : index
    %0 = vector.load %arg2[%c0, %c0_0, %c0_1] : memref<8x2x512xbf16, #tpu.memory_space<vmem>>, vector<1x2x512xbf16>
    %1 = vector.shape_cast %0 : vector<1x2x512xbf16> to vector<2x512xbf16>
    %2 = arith.extf %1 : vector<2x512xbf16> to vector<2x512xf32>
    %c0_2 = arith.constant 0 : index
    %c0_3 = arith.constant 0 : index
    %3 = memref.load %arg1[%c0_2, %c0_3] : memref<8x4xf32, #tpu.memory_space<smem>>
    %4 = vector.broadcast %3 : f32 to vector<2x512xf32>
    %5 = arith.mulf %2, %4 : vector<2x512xf32>
    %c1 = arith.constant 1 : index
    %c0_4 = arith.constant 0 : index
    %c0_5 = arith.constant 0 : index
    %6 = vector.load %arg2[%c1, %c0_4, %c0_5] : memref<8x2x512xbf16, #tpu.memory_space<vmem>>, vector<1x2x512xbf16>
    %7 = vector.shape_cast %6 : vector<1x2x512xbf16> to vector<2x512xbf16>
    %8 = arith.extf %7 : vector<2x512xbf16> to vector<2x512xf32>
    %c1_6 = arith.constant 1 : index
    %c0_7 = arith.constant 0 : index
    %9 = memref.load %arg1[%c1_6, %c0_7] : memref<8x4xf32, #tpu.memory_space<smem>>
    %10 = vector.broadcast %9 : f32 to vector<2x512xf32>
    %11 = arith.mulf %8, %10 : vector<2x512xf32>
    %12 = arith.addf %5, %11 : vector<2x512xf32>
    %c2 = arith.constant 2 : index
    %c0_8 = arith.constant 0 : index
    %c0_9 = arith.constant 0 : index
    %13 = vector.load %arg2[%c2, %c0_8, %c0_9] : memref<8x2x512xbf16, #tpu.memory_space<vmem>>, vector<1x2x512xbf16>
    %14 = vector.shape_cast %13 : vector<1x2x512xbf16> to vector<2x512xbf16>
    %15 = arith.extf %14 : vector<2x512xbf16> to vector<2x512xf32>
    %c2_10 = arith.constant 2 : index
    %c0_11 = arith.constant 0 : index
    %16 = memref.load %arg1[%c2_10, %c0_11] : memref<8x4xf32, #tpu.memory_space<smem>>
    %17 = vector.broadcast %16 : f32 to vector<2x512xf32>
    %18 = arith.mulf %15, %17 : vector<2x512xf32>
    %19 = arith.addf %12, %18 : vector<2x512xf32>
    %c3 = arith.constant 3 : index
    %c0_12 = arith.constant 0 : index
    %c0_13 = arith.constant 0 : index
    %20 = vector.load %arg2[%c3, %c0_12, %c0_13] : memref<8x2x512xbf16, #tpu.memory_space<vmem>>, vector<1x2x512xbf16>
    %21 = vector.shape_cast %20 : vector<1x2x512xbf16> to vector<2x512xbf16>
    %22 = arith.extf %21 : vector<2x512xbf16> to vector<2x512xf32>
    %c3_14 = arith.constant 3 : index
    %c0_15 = arith.constant 0 : index
    %23 = memref.load %arg1[%c3_14, %c0_15] : memref<8x4xf32, #tpu.memory_space<smem>>
    %24 = vector.broadcast %23 : f32 to vector<2x512xf32>
    %25 = arith.mulf %22, %24 : vector<2x512xf32>
    %26 = arith.addf %19, %25 : vector<2x512xf32>
    %c4 = arith.constant 4 : index
    %c0_16 = arith.constant 0 : index
    %c0_17 = arith.constant 0 : index
    %27 = vector.load %arg2[%c4, %c0_16, %c0_17] : memref<8x2x512xbf16, #tpu.memory_space<vmem>>, vector<1x2x512xbf16>
    %28 = vector.shape_cast %27 : vector<1x2x512xbf16> to vector<2x512xbf16>
    %29 = arith.extf %28 : vector<2x512xbf16> to vector<2x512xf32>
    %c4_18 = arith.constant 4 : index
    %c0_19 = arith.constant 0 : index
    %30 = memref.load %arg1[%c4_18, %c0_19] : memref<8x4xf32, #tpu.memory_space<smem>>
    %31 = vector.broadcast %30 : f32 to vector<2x512xf32>
    %32 = arith.mulf %29, %31 : vector<2x512xf32>
    %33 = arith.addf %26, %32 : vector<2x512xf32>
    %c5 = arith.constant 5 : index
    %c0_20 = arith.constant 0 : index
    %c0_21 = arith.constant 0 : index
    %34 = vector.load %arg2[%c5, %c0_20, %c0_21] : memref<8x2x512xbf16, #tpu.memory_space<vmem>>, vector<1x2x512xbf16>
    %35 = vector.shape_cast %34 : vector<1x2x512xbf16> to vector<2x512xbf16>
    %36 = arith.extf %35 : vector<2x512xbf16> to vector<2x512xf32>
    %c5_22 = arith.constant 5 : index
    %c0_23 = arith.constant 0 : index
    %37 = memref.load %arg1[%c5_22, %c0_23] : memref<8x4xf32, #tpu.memory_space<smem>>
    %38 = vector.broadcast %37 : f32 to vector<2x512xf32>
    %39 = arith.mulf %36, %38 : vector<2x512xf32>
    %40 = arith.addf %33, %39 : vector<2x512xf32>
    %c6 = arith.constant 6 : index
    %c0_24 = arith.constant 0 : index
    %c0_25 = arith.constant 0 : index
    %41 = vector.load %arg2[%c6, %c0_24, %c0_25] : memref<8x2x512xbf16, #tpu.memory_space<vmem>>, vector<1x2x512xbf16>
    %42 = vector.shape_cast %41 : vector<1x2x512xbf16> to vector<2x512xbf16>
    %43 = arith.extf %42 : vector<2x512xbf16> to vector<2x512xf32>
    %c6_26 = arith.constant 6 : index
    %c0_27 = arith.constant 0 : index
    %44 = memref.load %arg1[%c6_26, %c0_27] : memref<8x4xf32, #tpu.memory_space<smem>>
    %45 = vector.broadcast %44 : f32 to vector<2x512xf32>
    %46 = arith.mulf %43, %45 : vector<2x512xf32>
    %47 = arith.addf %40, %46 : vector<2x512xf32>
    %c7 = arith.constant 7 : index
    %c0_28 = arith.constant 0 : index
    %c0_29 = arith.constant 0 : index
    %48 = vector.load %arg2[%c7, %c0_28, %c0_29] : memref<8x2x512xbf16, #tpu.memory_space<vmem>>, vector<1x2x512xbf16>
    %49 = vector.shape_cast %48 : vector<1x2x512xbf16> to vector<2x512xbf16>
    %50 = arith.extf %49 : vector<2x512xbf16> to vector<2x512xf32>
    %c7_30 = arith.constant 7 : index
    %c0_31 = arith.constant 0 : index
    %51 = memref.load %arg1[%c7_30, %c0_31] : memref<8x4xf32, #tpu.memory_space<smem>>
    %52 = vector.broadcast %51 : f32 to vector<2x512xf32>
    %53 = arith.mulf %50, %52 : vector<2x512xf32>
    %54 = arith.addf %47, %53 : vector<2x512xf32>
    %c0_32 = arith.constant 0 : index
    %c0_33 = arith.constant 0 : index
    %55 = vector.load %arg3[%c0_32, %c0_33] : memref<4x512xbf16, #tpu.memory_space<vmem>>, vector<1x512xbf16>
    %56 = arith.extf %55 : vector<1x512xbf16> to vector<1x512xf32>
    %57 = vector.broadcast %56 : vector<1x512xf32> to vector<2x512xf32>
    %58 = arith.subf %54, %57 : vector<2x512xf32>
    %c0_34 = arith.constant 0 : index
    %c0_35 = arith.constant 0 : index
    %c0_36 = arith.constant 0 : index
    %59 = vector.load %arg2[%c0_34, %c0_35, %c0_36] : memref<8x2x512xbf16, #tpu.memory_space<vmem>>, vector<1x2x512xbf16>
    %60 = vector.shape_cast %59 : vector<1x2x512xbf16> to vector<2x512xbf16>
    %61 = arith.extf %60 : vector<2x512xbf16> to vector<2x512xf32>
    %c0_37 = arith.constant 0 : index
    %c1_38 = arith.constant 1 : index
    %62 = memref.load %arg1[%c0_37, %c1_38] : memref<8x4xf32, #tpu.memory_space<smem>>
    %63 = vector.broadcast %62 : f32 to vector<2x512xf32>
    %64 = arith.mulf %61, %63 : vector<2x512xf32>
    %c1_39 = arith.constant 1 : index
    %c0_40 = arith.constant 0 : index
    %c0_41 = arith.constant 0 : index
    %65 = vector.load %arg2[%c1_39, %c0_40, %c0_41] : memref<8x2x512xbf16, #tpu.memory_space<vmem>>, vector<1x2x512xbf16>
    %66 = vector.shape_cast %65 : vector<1x2x512xbf16> to vector<2x512xbf16>
    %67 = arith.extf %66 : vector<2x512xbf16> to vector<2x512xf32>
    %c1_42 = arith.constant 1 : index
    %c1_43 = arith.constant 1 : index
    %68 = memref.load %arg1[%c1_42, %c1_43] : memref<8x4xf32, #tpu.memory_space<smem>>
    %69 = vector.broadcast %68 : f32 to vector<2x512xf32>
    %70 = arith.mulf %67, %69 : vector<2x512xf32>
    %71 = arith.addf %64, %70 : vector<2x512xf32>
    %c2_44 = arith.constant 2 : index
    %c0_45 = arith.constant 0 : index
    %c0_46 = arith.constant 0 : index
    %72 = vector.load %arg2[%c2_44, %c0_45, %c0_46] : memref<8x2x512xbf16, #tpu.memory_space<vmem>>, vector<1x2x512xbf16>
    %73 = vector.shape_cast %72 : vector<1x2x512xbf16> to vector<2x512xbf16>
    %74 = arith.extf %73 : vector<2x512xbf16> to vector<2x512xf32>
    %c2_47 = arith.constant 2 : index
    %c1_48 = arith.constant 1 : index
    %75 = memref.load %arg1[%c2_47, %c1_48] : memref<8x4xf32, #tpu.memory_space<smem>>
    %76 = vector.broadcast %75 : f32 to vector<2x512xf32>
    %77 = arith.mulf %74, %76 : vector<2x512xf32>
    %78 = arith.addf %71, %77 : vector<2x512xf32>
    %c3_49 = arith.constant 3 : index
    %c0_50 = arith.constant 0 : index
    %c0_51 = arith.constant 0 : index
    %79 = vector.load %arg2[%c3_49, %c0_50, %c0_51] : memref<8x2x512xbf16, #tpu.memory_space<vmem>>, vector<1x2x512xbf16>
    %80 = vector.shape_cast %79 : vector<1x2x512xbf16> to vector<2x512xbf16>
    %81 = arith.extf %80 : vector<2x512xbf16> to vector<2x512xf32>
    %c3_52 = arith.constant 3 : index
    %c1_53 = arith.constant 1 : index
    %82 = memref.load %arg1[%c3_52, %c1_53] : memref<8x4xf32, #tpu.memory_space<smem>>
    %83 = vector.broadcast %82 : f32 to vector<2x512xf32>
    %84 = arith.mulf %81, %83 : vector<2x512xf32>
    %85 = arith.addf %78, %84 : vector<2x512xf32>
    %c4_54 = arith.constant 4 : index
    %c0_55 = arith.constant 0 : index
    %c0_56 = arith.constant 0 : index
    %86 = vector.load %arg2[%c4_54, %c0_55, %c0_56] : memref<8x2x512xbf16, #tpu.memory_space<vmem>>, vector<1x2x512xbf16>
    %87 = vector.shape_cast %86 : vector<1x2x512xbf16> to vector<2x512xbf16>
    %88 = arith.extf %87 : vector<2x512xbf16> to vector<2x512xf32>
    %c4_57 = arith.constant 4 : index
    %c1_58 = arith.constant 1 : index
    %89 = memref.load %arg1[%c4_57, %c1_58] : memref<8x4xf32, #tpu.memory_space<smem>>
    %90 = vector.broadcast %89 : f32 to vector<2x512xf32>
    %91 = arith.mulf %88, %90 : vector<2x512xf32>
    %92 = arith.addf %85, %91 : vector<2x512xf32>
    %c5_59 = arith.constant 5 : index
    %c0_60 = arith.constant 0 : index
    %c0_61 = arith.constant 0 : index
    %93 = vector.load %arg2[%c5_59, %c0_60, %c0_61] : memref<8x2x512xbf16, #tpu.memory_space<vmem>>, vector<1x2x512xbf16>
    %94 = vector.shape_cast %93 : vector<1x2x512xbf16> to vector<2x512xbf16>
    %95 = arith.extf %94 : vector<2x512xbf16> to vector<2x512xf32>
    %c5_62 = arith.constant 5 : index
    %c1_63 = arith.constant 1 : index
    %96 = memref.load %arg1[%c5_62, %c1_63] : memref<8x4xf32, #tpu.memory_space<smem>>
    %97 = vector.broadcast %96 : f32 to vector<2x512xf32>
    %98 = arith.mulf %95, %97 : vector<2x512xf32>
    %99 = arith.addf %92, %98 : vector<2x512xf32>
    %c6_64 = arith.constant 6 : index
    %c0_65 = arith.constant 0 : index
    %c0_66 = arith.constant 0 : index
    %100 = vector.load %arg2[%c6_64, %c0_65, %c0_66] : memref<8x2x512xbf16, #tpu.memory_space<vmem>>, vector<1x2x512xbf16>
    %101 = vector.shape_cast %100 : vector<1x2x512xbf16> to vector<2x512xbf16>
    %102 = arith.extf %101 : vector<2x512xbf16> to vector<2x512xf32>
    %c6_67 = arith.constant 6 : index
    %c1_68 = arith.constant 1 : index
    %103 = memref.load %arg1[%c6_67, %c1_68] : memref<8x4xf32, #tpu.memory_space<smem>>
    %104 = vector.broadcast %103 : f32 to vector<2x512xf32>
    %105 = arith.mulf %102, %104 : vector<2x512xf32>
    %106 = arith.addf %99, %105 : vector<2x512xf32>
    %c7_69 = arith.constant 7 : index
    %c0_70 = arith.constant 0 : index
    %c0_71 = arith.constant 0 : index
    %107 = vector.load %arg2[%c7_69, %c0_70, %c0_71] : memref<8x2x512xbf16, #tpu.memory_space<vmem>>, vector<1x2x512xbf16>
    %108 = vector.shape_cast %107 : vector<1x2x512xbf16> to vector<2x512xbf16>
    %109 = arith.extf %108 : vector<2x512xbf16> to vector<2x512xf32>
    %c7_72 = arith.constant 7 : index
    %c1_73 = arith.constant 1 : index
    %110 = memref.load %arg1[%c7_72, %c1_73] : memref<8x4xf32, #tpu.memory_space<smem>>
    %111 = vector.broadcast %110 : f32 to vector<2x512xf32>
    %112 = arith.mulf %109, %111 : vector<2x512xf32>
    %113 = arith.addf %106, %112 : vector<2x512xf32>
    %c1_74 = arith.constant 1 : index
    %c0_75 = arith.constant 0 : index
    %114 = vector.load %arg3[%c1_74, %c0_75] : memref<4x512xbf16, #tpu.memory_space<vmem>>, vector<1x512xbf16>
    %115 = arith.extf %114 : vector<1x512xbf16> to vector<1x512xf32>
    %116 = vector.broadcast %115 : vector<1x512xf32> to vector<2x512xf32>
    %117 = arith.subf %113, %116 : vector<2x512xf32>
    %c0_76 = arith.constant 0 : index
    %c0_77 = arith.constant 0 : index
    %c0_78 = arith.constant 0 : index
    %118 = vector.load %arg2[%c0_76, %c0_77, %c0_78] : memref<8x2x512xbf16, #tpu.memory_space<vmem>>, vector<1x2x512xbf16>
    %119 = vector.shape_cast %118 : vector<1x2x512xbf16> to vector<2x512xbf16>
    %120 = arith.extf %119 : vector<2x512xbf16> to vector<2x512xf32>
    %c0_79 = arith.constant 0 : index
    %c2_80 = arith.constant 2 : index
    %121 = memref.load %arg1[%c0_79, %c2_80] : memref<8x4xf32, #tpu.memory_space<smem>>
    %122 = vector.broadcast %121 : f32 to vector<2x512xf32>
    %123 = arith.mulf %120, %122 : vector<2x512xf32>
    %c1_81 = arith.constant 1 : index
    %c0_82 = arith.constant 0 : index
    %c0_83 = arith.constant 0 : index
    %124 = vector.load %arg2[%c1_81, %c0_82, %c0_83] : memref<8x2x512xbf16, #tpu.memory_space<vmem>>, vector<1x2x512xbf16>
    %125 = vector.shape_cast %124 : vector<1x2x512xbf16> to vector<2x512xbf16>
    %126 = arith.extf %125 : vector<2x512xbf16> to vector<2x512xf32>
    %c1_84 = arith.constant 1 : index
    %c2_85 = arith.constant 2 : index
    %127 = memref.load %arg1[%c1_84, %c2_85] : memref<8x4xf32, #tpu.memory_space<smem>>
    %128 = vector.broadcast %127 : f32 to vector<2x512xf32>
    %129 = arith.mulf %126, %128 : vector<2x512xf32>
    %130 = arith.addf %123, %129 : vector<2x512xf32>
    %c2_86 = arith.constant 2 : index
    %c0_87 = arith.constant 0 : index
    %c0_88 = arith.constant 0 : index
    %131 = vector.load %arg2[%c2_86, %c0_87, %c0_88] : memref<8x2x512xbf16, #tpu.memory_space<vmem>>, vector<1x2x512xbf16>
    %132 = vector.shape_cast %131 : vector<1x2x512xbf16> to vector<2x512xbf16>
    %133 = arith.extf %132 : vector<2x512xbf16> to vector<2x512xf32>
    %c2_89 = arith.constant 2 : index
    %c2_90 = arith.constant 2 : index
    %134 = memref.load %arg1[%c2_89, %c2_90] : memref<8x4xf32, #tpu.memory_space<smem>>
    %135 = vector.broadcast %134 : f32 to vector<2x512xf32>
    %136 = arith.mulf %133, %135 : vector<2x512xf32>
    %137 = arith.addf %130, %136 : vector<2x512xf32>
    %c3_91 = arith.constant 3 : index
    %c0_92 = arith.constant 0 : index
    %c0_93 = arith.constant 0 : index
    %138 = vector.load %arg2[%c3_91, %c0_92, %c0_93] : memref<8x2x512xbf16, #tpu.memory_space<vmem>>, vector<1x2x512xbf16>
    %139 = vector.shape_cast %138 : vector<1x2x512xbf16> to vector<2x512xbf16>
    %140 = arith.extf %139 : vector<2x512xbf16> to vector<2x512xf32>
    %c3_94 = arith.constant 3 : index
    %c2_95 = arith.constant 2 : index
    %141 = memref.load %arg1[%c3_94, %c2_95] : memref<8x4xf32, #tpu.memory_space<smem>>
    %142 = vector.broadcast %141 : f32 to vector<2x512xf32>
    %143 = arith.mulf %140, %142 : vector<2x512xf32>
    %144 = arith.addf %137, %143 : vector<2x512xf32>
    %c4_96 = arith.constant 4 : index
    %c0_97 = arith.constant 0 : index
    %c0_98 = arith.constant 0 : index
    %145 = vector.load %arg2[%c4_96, %c0_97, %c0_98] : memref<8x2x512xbf16, #tpu.memory_space<vmem>>, vector<1x2x512xbf16>
    %146 = vector.shape_cast %145 : vector<1x2x512xbf16> to vector<2x512xbf16>
    %147 = arith.extf %146 : vector<2x512xbf16> to vector<2x512xf32>
    %c4_99 = arith.constant 4 : index
    %c2_100 = arith.constant 2 : index
    %148 = memref.load %arg1[%c4_99, %c2_100] : memref<8x4xf32, #tpu.memory_space<smem>>
    %149 = vector.broadcast %148 : f32 to vector<2x512xf32>
    %150 = arith.mulf %147, %149 : vector<2x512xf32>
    %151 = arith.addf %144, %150 : vector<2x512xf32>
    %c5_101 = arith.constant 5 : index
    %c0_102 = arith.constant 0 : index
    %c0_103 = arith.constant 0 : index
    %152 = vector.load %arg2[%c5_101, %c0_102, %c0_103] : memref<8x2x512xbf16, #tpu.memory_space<vmem>>, vector<1x2x512xbf16>
    %153 = vector.shape_cast %152 : vector<1x2x512xbf16> to vector<2x512xbf16>
    %154 = arith.extf %153 : vector<2x512xbf16> to vector<2x512xf32>
    %c5_104 = arith.constant 5 : index
    %c2_105 = arith.constant 2 : index
    %155 = memref.load %arg1[%c5_104, %c2_105] : memref<8x4xf32, #tpu.memory_space<smem>>
    %156 = vector.broadcast %155 : f32 to vector<2x512xf32>
    %157 = arith.mulf %154, %156 : vector<2x512xf32>
    %158 = arith.addf %151, %157 : vector<2x512xf32>
    %c6_106 = arith.constant 6 : index
    %c0_107 = arith.constant 0 : index
    %c0_108 = arith.constant 0 : index
    %159 = vector.load %arg2[%c6_106, %c0_107, %c0_108] : memref<8x2x512xbf16, #tpu.memory_space<vmem>>, vector<1x2x512xbf16>
    %160 = vector.shape_cast %159 : vector<1x2x512xbf16> to vector<2x512xbf16>
    %161 = arith.extf %160 : vector<2x512xbf16> to vector<2x512xf32>
    %c6_109 = arith.constant 6 : index
    %c2_110 = arith.constant 2 : index
    %162 = memref.load %arg1[%c6_109, %c2_110] : memref<8x4xf32, #tpu.memory_space<smem>>
    %163 = vector.broadcast %162 : f32 to vector<2x512xf32>
    %164 = arith.mulf %161, %163 : vector<2x512xf32>
    %165 = arith.addf %158, %164 : vector<2x512xf32>
    %c7_111 = arith.constant 7 : index
    %c0_112 = arith.constant 0 : index
    %c0_113 = arith.constant 0 : index
    %166 = vector.load %arg2[%c7_111, %c0_112, %c0_113] : memref<8x2x512xbf16, #tpu.memory_space<vmem>>, vector<1x2x512xbf16>
    %167 = vector.shape_cast %166 : vector<1x2x512xbf16> to vector<2x512xbf16>
    %168 = arith.extf %167 : vector<2x512xbf16> to vector<2x512xf32>
    %c7_114 = arith.constant 7 : index
    %c2_115 = arith.constant 2 : index
    %169 = memref.load %arg1[%c7_114, %c2_115] : memref<8x4xf32, #tpu.memory_space<smem>>
    %170 = vector.broadcast %169 : f32 to vector<2x512xf32>
    %171 = arith.mulf %168, %170 : vector<2x512xf32>
    %172 = arith.addf %165, %171 : vector<2x512xf32>
    %c2_116 = arith.constant 2 : index
    %c0_117 = arith.constant 0 : index
    %173 = vector.load %arg3[%c2_116, %c0_117] : memref<4x512xbf16, #tpu.memory_space<vmem>>, vector<1x512xbf16>
    %174 = arith.extf %173 : vector<1x512xbf16> to vector<1x512xf32>
    %175 = vector.broadcast %174 : vector<1x512xf32> to vector<2x512xf32>
    %176 = arith.subf %172, %175 : vector<2x512xf32>
    %c0_118 = arith.constant 0 : index
    %c0_119 = arith.constant 0 : index
    %c0_120 = arith.constant 0 : index
    %177 = vector.load %arg2[%c0_118, %c0_119, %c0_120] : memref<8x2x512xbf16, #tpu.memory_space<vmem>>, vector<1x2x512xbf16>
    %178 = vector.shape_cast %177 : vector<1x2x512xbf16> to vector<2x512xbf16>
    %179 = arith.extf %178 : vector<2x512xbf16> to vector<2x512xf32>
    %c0_121 = arith.constant 0 : index
    %c3_122 = arith.constant 3 : index
    %180 = memref.load %arg1[%c0_121, %c3_122] : memref<8x4xf32, #tpu.memory_space<smem>>
    %181 = vector.broadcast %180 : f32 to vector<2x512xf32>
    %182 = arith.mulf %179, %181 : vector<2x512xf32>
    %c1_123 = arith.constant 1 : index
    %c0_124 = arith.constant 0 : index
    %c0_125 = arith.constant 0 : index
    %183 = vector.load %arg2[%c1_123, %c0_124, %c0_125] : memref<8x2x512xbf16, #tpu.memory_space<vmem>>, vector<1x2x512xbf16>
    %184 = vector.shape_cast %183 : vector<1x2x512xbf16> to vector<2x512xbf16>
    %185 = arith.extf %184 : vector<2x512xbf16> to vector<2x512xf32>
    %c1_126 = arith.constant 1 : index
    %c3_127 = arith.constant 3 : index
    %186 = memref.load %arg1[%c1_126, %c3_127] : memref<8x4xf32, #tpu.memory_space<smem>>
    %187 = vector.broadcast %186 : f32 to vector<2x512xf32>
    %188 = arith.mulf %185, %187 : vector<2x512xf32>
    %189 = arith.addf %182, %188 : vector<2x512xf32>
    %c2_128 = arith.constant 2 : index
    %c0_129 = arith.constant 0 : index
    %c0_130 = arith.constant 0 : index
    %190 = vector.load %arg2[%c2_128, %c0_129, %c0_130] : memref<8x2x512xbf16, #tpu.memory_space<vmem>>, vector<1x2x512xbf16>
    %191 = vector.shape_cast %190 : vector<1x2x512xbf16> to vector<2x512xbf16>
    %192 = arith.extf %191 : vector<2x512xbf16> to vector<2x512xf32>
    %c2_131 = arith.constant 2 : index
    %c3_132 = arith.constant 3 : index
    %193 = memref.load %arg1[%c2_131, %c3_132] : memref<8x4xf32, #tpu.memory_space<smem>>
    %194 = vector.broadcast %193 : f32 to vector<2x512xf32>
    %195 = arith.mulf %192, %194 : vector<2x512xf32>
    %196 = arith.addf %189, %195 : vector<2x512xf32>
    %c3_133 = arith.constant 3 : index
    %c0_134 = arith.constant 0 : index
    %c0_135 = arith.constant 0 : index
    %197 = vector.load %arg2[%c3_133, %c0_134, %c0_135] : memref<8x2x512xbf16, #tpu.memory_space<vmem>>, vector<1x2x512xbf16>
    %198 = vector.shape_cast %197 : vector<1x2x512xbf16> to vector<2x512xbf16>
    %199 = arith.extf %198 : vector<2x512xbf16> to vector<2x512xf32>
    %c3_136 = arith.constant 3 : index
    %c3_137 = arith.constant 3 : index
    %200 = memref.load %arg1[%c3_136, %c3_137] : memref<8x4xf32, #tpu.memory_space<smem>>
    %201 = vector.broadcast %200 : f32 to vector<2x512xf32>
    %202 = arith.mulf %199, %201 : vector<2x512xf32>
    %203 = arith.addf %196, %202 : vector<2x512xf32>
    %c4_138 = arith.constant 4 : index
    %c0_139 = arith.constant 0 : index
    %c0_140 = arith.constant 0 : index
    %204 = vector.load %arg2[%c4_138, %c0_139, %c0_140] : memref<8x2x512xbf16, #tpu.memory_space<vmem>>, vector<1x2x512xbf16>
    %205 = vector.shape_cast %204 : vector<1x2x512xbf16> to vector<2x512xbf16>
    %206 = arith.extf %205 : vector<2x512xbf16> to vector<2x512xf32>
    %c4_141 = arith.constant 4 : index
    %c3_142 = arith.constant 3 : index
    %207 = memref.load %arg1[%c4_141, %c3_142] : memref<8x4xf32, #tpu.memory_space<smem>>
    %208 = vector.broadcast %207 : f32 to vector<2x512xf32>
    %209 = arith.mulf %206, %208 : vector<2x512xf32>
    %210 = arith.addf %203, %209 : vector<2x512xf32>
    %c5_143 = arith.constant 5 : index
    %c0_144 = arith.constant 0 : index
    %c0_145 = arith.constant 0 : index
    %211 = vector.load %arg2[%c5_143, %c0_144, %c0_145] : memref<8x2x512xbf16, #tpu.memory_space<vmem>>, vector<1x2x512xbf16>
    %212 = vector.shape_cast %211 : vector<1x2x512xbf16> to vector<2x512xbf16>
    %213 = arith.extf %212 : vector<2x512xbf16> to vector<2x512xf32>
    %c5_146 = arith.constant 5 : index
    %c3_147 = arith.constant 3 : index
    %214 = memref.load %arg1[%c5_146, %c3_147] : memref<8x4xf32, #tpu.memory_space<smem>>
    %215 = vector.broadcast %214 : f32 to vector<2x512xf32>
    %216 = arith.mulf %213, %215 : vector<2x512xf32>
    %217 = arith.addf %210, %216 : vector<2x512xf32>
    %c6_148 = arith.constant 6 : index
    %c0_149 = arith.constant 0 : index
    %c0_150 = arith.constant 0 : index
    %218 = vector.load %arg2[%c6_148, %c0_149, %c0_150] : memref<8x2x512xbf16, #tpu.memory_space<vmem>>, vector<1x2x512xbf16>
    %219 = vector.shape_cast %218 : vector<1x2x512xbf16> to vector<2x512xbf16>
    %220 = arith.extf %219 : vector<2x512xbf16> to vector<2x512xf32>
    %c6_151 = arith.constant 6 : index
    %c3_152 = arith.constant 3 : index
    %221 = memref.load %arg1[%c6_151, %c3_152] : memref<8x4xf32, #tpu.memory_space<smem>>
    %222 = vector.broadcast %221 : f32 to vector<2x512xf32>
    %223 = arith.mulf %220, %222 : vector<2x512xf32>
    %224 = arith.addf %217, %223 : vector<2x512xf32>
    %c7_153 = arith.constant 7 : index
    %c0_154 = arith.constant 0 : index
    %c0_155 = arith.constant 0 : index
    %225 = vector.load %arg2[%c7_153, %c0_154, %c0_155] : memref<8x2x512xbf16, #tpu.memory_space<vmem>>, vector<1x2x512xbf16>
    %226 = vector.shape_cast %225 : vector<1x2x512xbf16> to vector<2x512xbf16>
    %227 = arith.extf %226 : vector<2x512xbf16> to vector<2x512xf32>
    %c7_156 = arith.constant 7 : index
    %c3_157 = arith.constant 3 : index
    %228 = memref.load %arg1[%c7_156, %c3_157] : memref<8x4xf32, #tpu.memory_space<smem>>
    %229 = vector.broadcast %228 : f32 to vector<2x512xf32>
    %230 = arith.mulf %227, %229 : vector<2x512xf32>
    %231 = arith.addf %224, %230 : vector<2x512xf32>
    %c3_158 = arith.constant 3 : index
    %c0_159 = arith.constant 0 : index
    %232 = vector.load %arg3[%c3_158, %c0_159] : memref<4x512xbf16, #tpu.memory_space<vmem>>, vector<1x512xbf16>
    %233 = arith.extf %232 : vector<1x512xbf16> to vector<1x512xf32>
    %234 = vector.broadcast %233 : vector<1x512xf32> to vector<2x512xf32>
    %235 = arith.subf %231, %234 : vector<2x512xf32>
    %c0_160 = arith.constant 0 : index
    %c0_161 = arith.constant 0 : index
    %c0_162 = arith.constant 0 : index
    %236 = vector.load %arg4[%c0_160, %c0_161, %c0_162] : memref<4x4x512xbf16, #tpu.memory_space<vmem>>, vector<1x1x512xbf16>
    %237 = vector.shape_cast %236 : vector<1x1x512xbf16> to vector<1x512xbf16>
    %238 = arith.extf %237 : vector<1x512xbf16> to vector<1x512xf32>
    %239 = vector.broadcast %238 : vector<1x512xf32> to vector<2x512xf32>
    %240 = arith.mulf %58, %239 : vector<2x512xf32>
    %c0_163 = arith.constant 0 : index
    %c1_164 = arith.constant 1 : index
    %c0_165 = arith.constant 0 : index
    %241 = vector.load %arg4[%c0_163, %c1_164, %c0_165] : memref<4x4x512xbf16, #tpu.memory_space<vmem>>, vector<1x1x512xbf16>
    %242 = vector.shape_cast %241 : vector<1x1x512xbf16> to vector<1x512xbf16>
    %243 = arith.extf %242 : vector<1x512xbf16> to vector<1x512xf32>
    %244 = vector.broadcast %243 : vector<1x512xf32> to vector<2x512xf32>
    %245 = arith.mulf %117, %244 : vector<2x512xf32>
    %246 = arith.addf %240, %245 : vector<2x512xf32>
    %c0_166 = arith.constant 0 : index
    %c2_167 = arith.constant 2 : index
    %c0_168 = arith.constant 0 : index
    %247 = vector.load %arg4[%c0_166, %c2_167, %c0_168] : memref<4x4x512xbf16, #tpu.memory_space<vmem>>, vector<1x1x512xbf16>
    %248 = vector.shape_cast %247 : vector<1x1x512xbf16> to vector<1x512xbf16>
    %249 = arith.extf %248 : vector<1x512xbf16> to vector<1x512xf32>
    %250 = vector.broadcast %249 : vector<1x512xf32> to vector<2x512xf32>
    %251 = arith.mulf %176, %250 : vector<2x512xf32>
    %252 = arith.addf %246, %251 : vector<2x512xf32>
    %c0_169 = arith.constant 0 : index
    %c3_170 = arith.constant 3 : index
    %c0_171 = arith.constant 0 : index
    %253 = vector.load %arg4[%c0_169, %c3_170, %c0_171] : memref<4x4x512xbf16, #tpu.memory_space<vmem>>, vector<1x1x512xbf16>
    %254 = vector.shape_cast %253 : vector<1x1x512xbf16> to vector<1x512xbf16>
    %255 = arith.extf %254 : vector<1x512xbf16> to vector<1x512xf32>
    %256 = vector.broadcast %255 : vector<1x512xf32> to vector<2x512xf32>
    %257 = arith.mulf %235, %256 : vector<2x512xf32>
    %258 = arith.addf %252, %257 : vector<2x512xf32>
    %259 = arith.mulf %58, %258 : vector<2x512xf32>
    %c1_172 = arith.constant 1 : index
    %c0_173 = arith.constant 0 : index
    %c0_174 = arith.constant 0 : index
    %260 = vector.load %arg4[%c1_172, %c0_173, %c0_174] : memref<4x4x512xbf16, #tpu.memory_space<vmem>>, vector<1x1x512xbf16>
    %261 = vector.shape_cast %260 : vector<1x1x512xbf16> to vector<1x512xbf16>
    %262 = arith.extf %261 : vector<1x512xbf16> to vector<1x512xf32>
    %263 = vector.broadcast %262 : vector<1x512xf32> to vector<2x512xf32>
    %264 = arith.mulf %58, %263 : vector<2x512xf32>
    %c1_175 = arith.constant 1 : index
    %c1_176 = arith.constant 1 : index
    %c0_177 = arith.constant 0 : index
    %265 = vector.load %arg4[%c1_175, %c1_176, %c0_177] : memref<4x4x512xbf16, #tpu.memory_space<vmem>>, vector<1x1x512xbf16>
    %266 = vector.shape_cast %265 : vector<1x1x512xbf16> to vector<1x512xbf16>
    %267 = arith.extf %266 : vector<1x512xbf16> to vector<1x512xf32>
    %268 = vector.broadcast %267 : vector<1x512xf32> to vector<2x512xf32>
    %269 = arith.mulf %117, %268 : vector<2x512xf32>
    %270 = arith.addf %264, %269 : vector<2x512xf32>
    %c1_178 = arith.constant 1 : index
    %c2_179 = arith.constant 2 : index
    %c0_180 = arith.constant 0 : index
    %271 = vector.load %arg4[%c1_178, %c2_179, %c0_180] : memref<4x4x512xbf16, #tpu.memory_space<vmem>>, vector<1x1x512xbf16>
    %272 = vector.shape_cast %271 : vector<1x1x512xbf16> to vector<1x512xbf16>
    %273 = arith.extf %272 : vector<1x512xbf16> to vector<1x512xf32>
    %274 = vector.broadcast %273 : vector<1x512xf32> to vector<2x512xf32>
    %275 = arith.mulf %176, %274 : vector<2x512xf32>
    %276 = arith.addf %270, %275 : vector<2x512xf32>
    %c1_181 = arith.constant 1 : index
    %c3_182 = arith.constant 3 : index
    %c0_183 = arith.constant 0 : index
    %277 = vector.load %arg4[%c1_181, %c3_182, %c0_183] : memref<4x4x512xbf16, #tpu.memory_space<vmem>>, vector<1x1x512xbf16>
    %278 = vector.shape_cast %277 : vector<1x1x512xbf16> to vector<1x512xbf16>
    %279 = arith.extf %278 : vector<1x512xbf16> to vector<1x512xf32>
    %280 = vector.broadcast %279 : vector<1x512xf32> to vector<2x512xf32>
    %281 = arith.mulf %235, %280 : vector<2x512xf32>
    %282 = arith.addf %276, %281 : vector<2x512xf32>
    %283 = arith.mulf %117, %282 : vector<2x512xf32>
    %284 = arith.addf %259, %283 : vector<2x512xf32>
    %c2_184 = arith.constant 2 : index
    %c0_185 = arith.constant 0 : index
    %c0_186 = arith.constant 0 : index
    %285 = vector.load %arg4[%c2_184, %c0_185, %c0_186] : memref<4x4x512xbf16, #tpu.memory_space<vmem>>, vector<1x1x512xbf16>
    %286 = vector.shape_cast %285 : vector<1x1x512xbf16> to vector<1x512xbf16>
    %287 = arith.extf %286 : vector<1x512xbf16> to vector<1x512xf32>
    %288 = vector.broadcast %287 : vector<1x512xf32> to vector<2x512xf32>
    %289 = arith.mulf %58, %288 : vector<2x512xf32>
    %c2_187 = arith.constant 2 : index
    %c1_188 = arith.constant 1 : index
    %c0_189 = arith.constant 0 : index
    %290 = vector.load %arg4[%c2_187, %c1_188, %c0_189] : memref<4x4x512xbf16, #tpu.memory_space<vmem>>, vector<1x1x512xbf16>
    %291 = vector.shape_cast %290 : vector<1x1x512xbf16> to vector<1x512xbf16>
    %292 = arith.extf %291 : vector<1x512xbf16> to vector<1x512xf32>
    %293 = vector.broadcast %292 : vector<1x512xf32> to vector<2x512xf32>
    %294 = arith.mulf %117, %293 : vector<2x512xf32>
    %295 = arith.addf %289, %294 : vector<2x512xf32>
    %c2_190 = arith.constant 2 : index
    %c2_191 = arith.constant 2 : index
    %c0_192 = arith.constant 0 : index
    %296 = vector.load %arg4[%c2_190, %c2_191, %c0_192] : memref<4x4x512xbf16, #tpu.memory_space<vmem>>, vector<1x1x512xbf16>
    %297 = vector.shape_cast %296 : vector<1x1x512xbf16> to vector<1x512xbf16>
    %298 = arith.extf %297 : vector<1x512xbf16> to vector<1x512xf32>
    %299 = vector.broadcast %298 : vector<1x512xf32> to vector<2x512xf32>
    %300 = arith.mulf %176, %299 : vector<2x512xf32>
    %301 = arith.addf %295, %300 : vector<2x512xf32>
    %c2_193 = arith.constant 2 : index
    %c3_194 = arith.constant 3 : index
    %c0_195 = arith.constant 0 : index
    %302 = vector.load %arg4[%c2_193, %c3_194, %c0_195] : memref<4x4x512xbf16, #tpu.memory_space<vmem>>, vector<1x1x512xbf16>
    %303 = vector.shape_cast %302 : vector<1x1x512xbf16> to vector<1x512xbf16>
    %304 = arith.extf %303 : vector<1x512xbf16> to vector<1x512xf32>
    %305 = vector.broadcast %304 : vector<1x512xf32> to vector<2x512xf32>
    %306 = arith.mulf %235, %305 : vector<2x512xf32>
    %307 = arith.addf %301, %306 : vector<2x512xf32>
    %308 = arith.mulf %176, %307 : vector<2x512xf32>
    %309 = arith.addf %284, %308 : vector<2x512xf32>
    %c3_196 = arith.constant 3 : index
    %c0_197 = arith.constant 0 : index
    %c0_198 = arith.constant 0 : index
    %310 = vector.load %arg4[%c3_196, %c0_197, %c0_198] : memref<4x4x512xbf16, #tpu.memory_space<vmem>>, vector<1x1x512xbf16>
    %311 = vector.shape_cast %310 : vector<1x1x512xbf16> to vector<1x512xbf16>
    %312 = arith.extf %311 : vector<1x512xbf16> to vector<1x512xf32>
    %313 = vector.broadcast %312 : vector<1x512xf32> to vector<2x512xf32>
    %314 = arith.mulf %58, %313 : vector<2x512xf32>
    %c3_199 = arith.constant 3 : index
    %c1_200 = arith.constant 1 : index
    %c0_201 = arith.constant 0 : index
    %315 = vector.load %arg4[%c3_199, %c1_200, %c0_201] : memref<4x4x512xbf16, #tpu.memory_space<vmem>>, vector<1x1x512xbf16>
    %316 = vector.shape_cast %315 : vector<1x1x512xbf16> to vector<1x512xbf16>
    %317 = arith.extf %316 : vector<1x512xbf16> to vector<1x512xf32>
    %318 = vector.broadcast %317 : vector<1x512xf32> to vector<2x512xf32>
    %319 = arith.mulf %117, %318 : vector<2x512xf32>
    %320 = arith.addf %314, %319 : vector<2x512xf32>
    %c3_202 = arith.constant 3 : index
    %c2_203 = arith.constant 2 : index
    %c0_204 = arith.constant 0 : index
    %321 = vector.load %arg4[%c3_202, %c2_203, %c0_204] : memref<4x4x512xbf16, #tpu.memory_space<vmem>>, vector<1x1x512xbf16>
    %322 = vector.shape_cast %321 : vector<1x1x512xbf16> to vector<1x512xbf16>
    %323 = arith.extf %322 : vector<1x512xbf16> to vector<1x512xf32>
    %324 = vector.broadcast %323 : vector<1x512xf32> to vector<2x512xf32>
    %325 = arith.mulf %176, %324 : vector<2x512xf32>
    %326 = arith.addf %320, %325 : vector<2x512xf32>
    %c3_205 = arith.constant 3 : index
    %c3_206 = arith.constant 3 : index
    %c0_207 = arith.constant 0 : index
    %327 = vector.load %arg4[%c3_205, %c3_206, %c0_207] : memref<4x4x512xbf16, #tpu.memory_space<vmem>>, vector<1x1x512xbf16>
    %328 = vector.shape_cast %327 : vector<1x1x512xbf16> to vector<1x512xbf16>
    %329 = arith.extf %328 : vector<1x512xbf16> to vector<1x512xf32>
    %330 = vector.broadcast %329 : vector<1x512xf32> to vector<2x512xf32>
    %331 = arith.mulf %235, %330 : vector<2x512xf32>
    %332 = arith.addf %326, %331 : vector<2x512xf32>
    %333 = arith.mulf %235, %332 : vector<2x512xf32>
    %334 = arith.addf %309, %333 : vector<2x512xf32>
    %335 = math.absf %334 : vector<2x512xf32>
    %336 = math.sqrt %335 : vector<2x512xf32>
    %c0_208 = arith.constant 0 : index
    %c0_209 = arith.constant 0 : index
    %337 = vector.load %arg5[%c0_208, %c0_209] : memref<2x512xf32, #tpu.memory_space<vmem>>, vector<2x512xf32>
    tpu.vector_store %arg5[%c0_208, %c0_209], %336 {strides = array<i32>} : memref<2x512xf32, #tpu.memory_space<vmem>>, vector<2x512xf32>,
    return
  }
  func.func @transform_0(%arg0: i32) -> (i32, i32) {
    %c0_i32 = arith.constant 0 : i32
    %c0_i32_0 = arith.constant 0 : i32
    %c0_i32_1 = arith.constant 0 : i32
    return %c0_i32, %c0_i32_0 : i32, i32
  }
  func.func @transform_1(%arg0: i32) -> (i32, i32, i32) {
    %c0_i32 = arith.constant 0 : i32
    %c0_i32_0 = arith.constant 0 : i32
    %c0_i32_1 = arith.constant 0 : i32
    return %c0_i32, %c0_i32_0, %arg0 : i32, i32, i32
  }
  func.func @transform_2(%arg0: i32) -> (i32, i32) {
    %c0_i32 = arith.constant 0 : i32
    %c0_i32_0 = arith.constant 0 : i32
    return %c0_i32, %arg0 : i32, i32
  }
  func.func @transform_3(%arg0: i32) -> (i32, i32, i32) {
    %c0_i32 = arith.constant 0 : i32
    %c0_i32_0 = arith.constant 0 : i32
    %c0_i32_1 = arith.constant 0 : i32
    return %c0_i32, %c0_i32_0, %arg0 : i32, i32, i32
  }
  func.func @transform_4(%arg0: i32) -> (i32, i32) {
    %c0_i32 = arith.constant 0 : i32
    %c0_i32_0 = arith.constant 0 : i32
    return %c0_i32, %arg0 : i32, i32
  }
}

</mosaic_0001>

<bundles_post_ra>
// kernel: tpu_custom_call.1
= control target key start
LH: loop header
LB: loop body
LE: loop exit
PB: predicated region body
PF: predicated region fallthrough
CT: control target
= control target key end

     0   :  { %s2009_s0 = inlined_call_operand.vmem [shape: f32[8,4], index: 0, kind: input, shape index: {}]   ;;  %s2010_s1 = inlined_call_operand.hbm [shape: bf16[8,2,1024], index: 1, kind: input, shape index: {}]   ;;  %s2011_s2 = inlined_call_operand.hbm [shape: bf16[4,1024], index: 2, kind: input, shape index: {}]   ;;  %s2012_s3 = inlined_call_operand.hbm [shape: bf16[4,4,1024], index: 3, kind: input, shape index: {}]   ;;  %s2013_s4 = inlined_call_operand.hbm [shape: f32[2,1024], index: 4, kind: output, shape index: {}]  }
   0x1   :  { %2015 = sst [smem:[#allocation16_spill]] %s2009_s0 }
   0x2   :  { %2016 = sst [smem:[#allocation17_spill]] %s2011_s2 }
   0x3   :  { %9 = vsyncpa [#allocation5], 0 }
   0x4   :  { %10 = vsyncpa [#allocation3], 0 }
   0x5   :  { %12 = vsyncpa [#allocation3 + $0x1], 0 }
   0x6   :  { %13 = vsyncpa [#allocation8], 0 }
   0x7   :  { %15 = vsyncpa [#allocation8 + $0x1], 0 }
   0x8   :  { %16 = vsyncpa [#allocation4], 0 }
   0x9   :  { %18 = vsyncpa [#allocation4 + $0x1], 0  ;;  %s1528_s15 = smov 0   ;;  %s1530_s16 = smov 0  }
   0xa   :  { %s1532_s17 = smov 0   ;;  %s1534_s18 = smov 0  }
   0xb LB: > { %s1549_s19 = sadd.s32 1, %s1495_s18   ;;  %s52_s20 = sadd.s32 1, %s1491_s17  ;;  %s1495_s18 = sphi %s1534_s18, %s2032_s18   ;;  %s1491_s17 = sphi %s1532_s17, %s2031_s17   ;;  %s1487_s16 = sphi %s1530_s16, %s2030_s16   ;;  %s1483_s15 = sphi %s1528_s15, %s2029_s15  }
   0xc   : > { %s49_s21 = ssub.s32 %s1495_s18, %s1549_s19  ;;  %p59_p0 = scmp.ne.s32.totalorder %s1491_s17, %s1487_s16 }
   0xd   : > { %p50_p1 = scmp.eq.s32.totalorder %s49_s21, 0  ;;  %p60_p2 = scmp.eq.s32.totalorder %s1495_s18, 0 }
   0xe   : > { %p1273_p4 = scmp.lt.s32.totalorder %s1495_s18, 2  ;;  %s1566_s23 = sand.u32 1, %s1491_s17  }
   0xf   : > { %s1560_s22 = scalar_select %p50_p1, %s1491_s17, %s52_s20  }
  0x10   : > { %p61_p5 = por %p60_p2, %p59_p0  ;;  %s1176_s24 = sshll.u32 %s1566_s23, 5 }
  0x11   : > { %2017 = sst [smem:[#allocation15_spill]] %s1560_s22  ;;  %s181_s26 = scalar_lea.vmem [#allocation6], %s1176_s24 }
  0x12   : > { %p1569_p6 = pnand %p1273_p4, %p61_p5  ;;  %s188_s27 = sshll.u32 %s181_s26, 4  ;;  %s1576_s27 = int_to_ptr.vmem [resolvable:$true] %s188_s27 }
  0x13   : > { %s198_s28 = sand.u32 1, %s1495_s18   ;;  %s1178_s29 = sshll.u32 %s1566_s23, 3 }
  0x14   : > { %s1239_s30 = sshll.u32 %s1495_s18, 3  ;;  %s2019_s2 = sld [smem:[#allocation17_spill]] }
  0x15   : > { %s202_s8 = scalar_lea.vmem [#allocation7], %s1178_s29  ;;  %s1583_s11 = scalar_lea.sflag [#allocation8], %s198_s28 }
  0x16   : > { %s211_s9 = sshll.u32 %s202_s8, 4  ;;  %p1320_p8 = pneg %p1569_p6  ;;  %s212_s9 = int_to_ptr.vmem [resolvable:$true] %s211_s9 }
  0x1a   : > { %s207_s7 = scalar_lea.hbm %s2019_s2, %s1239_s30  ;;  %s1323_s21 = scalar_lea.hbm %s2019_s2, 16 }
  0x1b   : > { %s209_s10 = sshll.u32 %s207_s7, 4  ;;  %s210_s10 = int_to_ptr.hbm [resolvable:$true] %s209_s10 }
  0x1c   : > { %s1316_s12 = sshra.s32 %s210_s10, 4  ;;  %s1317_s12 = int_to_ptr.hbm [resolvable:$true] %s1316_s12 }
  0x1d   : > { %s1318_s13 = scalar_lea.hbm %s1317_s12, 8  ;;  %p1324_p11 = scmp.lt.s32.totalorder %s1317_s12, %s2019_s2 }
  0x1e   : > { %p1319_p7 = scmp.ne.s32.totalorder %s1317_s12, %s1318_s13  ;;  %p1325_p12 = scmp.lt.s32.totalorder %s1323_s21, %s1318_s13 }
  0x20   : > { %p1321_p9 = pnand %p1320_p8, %p1319_p7  ;;  %p1326_p13 = por %p1325_p12, %p1324_p11 }
  0x22   : > { %p1322_p10 = pneg %p1321_p9 }
  0x24   : > { %p1327_p1 = pnand %p1326_p13, %p1322_p10 }
  0x26   : > { %1330 = shalt.err (!%p1327_p1)
}
  0x27   : > { %1264 = dma.hbm_to_vmem [thread:$0]  (!%p1569_p6), %s210_s10, 128, %s212_s9, %s1583_s11  }
  0x28   : > { %s227_s6 = scalar_lea.hbm %s2012_s3, %s1239_s30  ;;  %s222_s7 = scalar_lea.vmem [#allocation9], %s1176_s24 }
  0x29   : > { %s230_s8 = sshll.u32 %s222_s7, 4  ;;  %s228_s12 = sshll.u32 %s227_s6, 4  ;;  %s1604_s8 = int_to_ptr.vmem [resolvable:$true] %s230_s8  ;;  %s1606_s12 = int_to_ptr.hbm [resolvable:$true] %s228_s12 }
  0x2a   : > { %s1609_s13 = sadd.s32 4294967295, %s1495_s18   ;;  %s1172_s9 = sadd.s32 4294967294, %s1495_s18  }
  0x2b   : > { %p65_p2 = scmp.ne.s32.totalorder %s1487_s16, %s1483_s15  ;;  %p2014_p4 = scmp.eq.s32.totalorder %s1609_s13, 0 }
  0x2c   : > { %p141_p5 = scmp.eq.s32.totalorder %s1609_s13, 1  ;;  %p147_p7 = scmp.eq.s32.totalorder %s1172_s9, 1 }
  0x2d   : > { %p1173_p9 = scmp.ge.s32.totalorder %s1495_s18, 1  ;;  %p1619_p10 = por %p2014_p4, %p65_p2 }
  0x2e   : > { %p1626_p11 = por %p141_p5, %p59_p0  ;;  %p1630_p12 = por %p147_p7, %p65_p2 }
  0x2f   : > { %p154_p13 = scmp.lt.s32.totalorder %s1495_s18, 3  ;;  %s2023_s0 = sld [smem:[#allocation16_spill]] }
  0x30   : > { %s1177_s29 = sshll.u32 %s1495_s18, 2  ;;  %s1497_s9 = smov [#allocation2]  }
  0x31   : > { %p1638_p1 = pnand %p1173_p9, %p154_p13  ;;  %s185_s6 = scalar_lea.hbm %s2010_s1, %s1177_s29 }
  0x32   : > { %s186_s7 = sshll.u32 %s185_s6, 4  ;;  %s178_s14 = scalar_lea.sflag [#allocation3], %s1566_s23  ;;  %s187_s7 = int_to_ptr.hbm [resolvable:$true] %s186_s7 }
  0x33   : > { %p1254_p0 = pneg %p1638_p1  ;;  %s1361_s20 = sshra.s32 %s187_s7, 4  ;;  %s1362_s20 = int_to_ptr.hbm [resolvable:$true] %s1361_s20 }
  0x34   : > { %s1368_s28 = scalar_lea.hbm %s2010_s1, 64  ;;  %p1369_p13 = scmp.lt.s32.totalorder %s1362_s20, %s2010_s1 }
  0x35   : > { %s166_s21 = sshll.u32 %s2023_s0, 4  ;;  %p1255_p2 = pnand %p1254_p0, %p2014_p4  ;;  %s167_s21 = int_to_ptr.vmem [resolvable:$true] %s166_s21 }
  0x36   : > { %s1363_s0 = scalar_lea.hbm %s1362_s20, 32 }
  0x37   : > { %1257 = dma.vmem_to_smem (!%p1255_p2), %s167_s21, 128, %s1497_s9, [#allocation5]  }
  0x38   : > { %p1364_p5 = scmp.ne.s32.totalorder %s1362_s20, %s1363_s0  ;;  %p1370_p0 = scmp.lt.s32.totalorder %s1368_s28, %s1363_s0 }
  0x3a   : > { %p1366_p7 = pnand %p1364_p5, %p1320_p8  ;;  %p1371_p3 = por %p1370_p0, %p1369_p13 }
  0x3c   : > { %p1367_p9 = pneg %p1366_p7 }
  0x3e   : > { %p1372_p2 = pnand %p1371_p3, %p1367_p9 }
  0x40   : > { %1375 = shalt.err (!%p1372_p2)
}
  0x41   : > { %s1498_s23 = smov 128   ;;  %s1499_s21 = smov 64  }
  0x42   : > { %s1500_s6 = smov 4   ;;  %s1391_s9 = sshra.s32 %s1606_s12, 4  ;;  %s1392_s9 = int_to_ptr.hbm [resolvable:$true] %s1391_s9 }
  0x43   : > { %1261 = dma.hbm_to_vmem [thread:$0]  (!%p1569_p6), %s187_s7, 512, %s1576_s27, %s178_s14, %s1498_s23, %s1499_s21, %s1500_s6  }
  0x44   : > { %s1393_s2 = scalar_lea.hbm %s1392_s9, 32  ;;  %s1398_s20 = scalar_lea.hbm %s2012_s3, 64 }
  0x45   : > { %p1394_p5 = scmp.ne.s32.totalorder %s1392_s9, %s1393_s2  ;;  %p1399_p3 = scmp.lt.s32.totalorder %s1392_s9, %s2012_s3 }
  0x46   : > { %p1400_p9 = scmp.lt.s32.totalorder %s1398_s20, %s1393_s2 }
  0x47   : > { %p1396_p7 = pnand %p1394_p5, %p1320_p8 }
  0x48   : > { %p1401_p13 = por %p1400_p9, %p1399_p3 }
  0x49   : > { %p1397_p4 = pneg %p1396_p7 }
  0x4b   : > { %p1402_p0 = pnand %p1401_p13, %p1397_p4 }
  0x4d   : > { %1405 = shalt.err (!%p1402_p0)
}
  0x4e   : > { %s1501_s27 = smov 256   ;;  %s1502_s7 = smov 8  }
  0x4f   : > { %1267 = dma.hbm_to_vmem [thread:$0]  (!%p1569_p6), %s1606_s12, 512, %s1604_s8, %s1583_s11, %s1501_s27, %s1498_s23, %s1502_s7  }
  0x50   : > { %242 = sbr.rel (%p1638_p1) target bundleno = 241 (0xf1), region = 36  ;;  %p2025_p8 = scmp.eq.s32.totalorder (!%p1638_p1), %s1609_s13, 0 }
  0x55   : > { %1466 = dma.done.wait (%p2025_p8), [#allocation5], 128   ;;  %p2026_p2 = pmov %p2025_p8 }
  0x56   : > { %s1685_s14 = sand.u32 1, %s1487_s16  }
  0x57   : > { %1468 = vsyncadd (%p2026_p2), [#allocation5], 4294967168  ;;  %s1186_s5 = sshll.u32 %s1685_s14, 5  ;;  %s250_s21 = scalar_lea.sflag [#allocation3], %s1685_s14 }
  0x58   : > { %s253_s6 = scalar_lea.vmem [#allocation6], %s1186_s5 }
  0x59   : > { %1470 = dma.done.wait (%p1619_p10), %s250_s21, 512  }
  0x5a   : > { %1472 = vsyncadd (%p1619_p10), %s250_s21, 4294966784  ;;  %s259_s25 = sand.u32 1, %s1609_s13   ;;  %s1187_s11 = sshll.u32 %s1685_s14, 3 }
  0x5b   : > { %s260_s8 = scalar_lea.sflag [#allocation8], %s259_s25  ;;  %s263_s12 = scalar_lea.vmem [#allocation7], %s1187_s11 }
  0x5c   : > { %1474 = dma.done.wait (%p1619_p10), %s260_s8, 640  }
  0x5d   : > { %1476 = vsyncadd (%p1619_p10), %s260_s8, 4294966656  ;;  %s1701_s26 = scalar_lea.vmem [#allocation9], %s1186_s5 }
  0x5e   : > { %279 = sfence }
  0x5f   : > { %v314_v0 = vld [vmem:[%s253_s6] sm:$0xff]   ;;  %s1703_s23 = sld [smem:[#allocation2]]  ;;  %v1192_v1 = vld [vmem:[%s253_s6 + $0x8] sm:$0xff]   ;;  %v1196_v2 = vld [vmem:[%s253_s6 + $0x10] sm:$0xff]   ;;  %vm392_vm0 = vcmask 1041408   ;;  %vm394_vm1 = vcmask 1045508  }
  0x60   : > { %s1705_s9 = sld [smem:[#allocation2 + $0x80]]  ;;  %v1200_v3 = vld [vmem:[%s253_s6 + $0x18] sm:$0xff]   ;;  %v368_v4 = vld [vmem:[%s263_s12] sm:$0x55]  ;;  %v1707_v5 = vunpack.c.l.bf16 %v314_v0  ;;  %v1709_v6 = vunpack.c.h.bf16 %v314_v0  ;;  %v1711_v7 = vunpack.c.l.bf16 %v1192_v1  ;;  %v1715_v8 = vunpack.c.h.bf16 %v1192_v1  ;;  %v486_v13 = vld [vmem:[%s263_s12] sm:$0xaa] }
  0x61   : > { %s1713_s24 = sld [smem:[#allocation2 + $0x100]]  ;;  %v1719_v9 = vunpack.c.l.bf16 %v1196_v2  ;;  %v1721_v10 = vunpack.c.h.bf16 %v1196_v2  ;;  %v369_v11 = vunpack.c.l.bf16 %v368_v4  ;;  %v370_v12 = vunpack.c.h.bf16 %v368_v4  ;;  %v1780_v0 = vld [vmem:[%s1701_s26] sm:$0x55] }
  0x62   : > { %s1717_s2 = sld [smem:[#allocation2 + $0x180]]  ;;  %v1725_v14 = vunpack.c.l.bf16 %v1200_v3  ;;  %v1727_v15 = vunpack.c.h.bf16 %v1200_v3  ;;  %v1734_v22 = vunpack.c.l.bf16 %v486_v13  ;;  %v1736_v23 = vunpack.c.h.bf16 %v486_v13 }
  0x63   : > { %s1723_s0 = sld [smem:[#allocation2 + $0x200]]  ;;  %v373_v16 = vperm.slane %v369_v11, 0  ;;  %v374_v17 = vperm.slane %v369_v11, 4  ;;  %v375_v18 = vperm.slane %v370_v12, 0  ;;  %v376_v19 = vperm.slane %v370_v12, 4 }
  0x64   : > { %s1729_s22 = sld [smem:[#allocation2 + $0x280]]  ;;  %v431_v21 = vperm.slane %v369_v11, 1  ;;  %v432_v35 = vperm.slane %v369_v11, 5  ;;  %vm396_vm2 = vcmask 1043456   ;;  %v433_v42 = vperm.slane %v370_v12, 1 }
  0x65   : > { %v317_v20 = vstv %s1703_s23  ;;  %s1732_s20 = sld [smem:[#allocation2 + $0x300]]  ;;  %v381_v26 = vperm.slane %v373_v16, 0  ;;  %v382_v27 = vperm.slane %v374_v17, 0  ;;  %v383_v30 = vperm.slane %v375_v18, 0 }
  0x66   : > { %v318_v24 = vmul.f32 %v317_v20, %v1707_v5  ;;  %v323_v25 = vstv %s1705_s9  ;;  %s1740_s28 = sld [smem:[#allocation2 + $0x380]]  ;;  %v384_v31 = vperm.slane %v376_v19, 0  ;;  %v434_v43 = vperm.slane %v370_v12, 5 }
  0x67   : > { %v324_v28 = vmul.f32 %v323_v25, %v1709_v6  ;;  %v330_v29 = vstv %s1713_s24  ;;  %s1744_s29 = sld [smem:[#allocation2 + $0x1]]  ;;  %v389_v34 = vrot.slane %v382_v27, 6  ;;  %v390_v39 = vrot.slane %v383_v30, 4 }
  0x68   : > { %v331_v32 = vmul.f32 %v330_v29, %v1711_v7  ;;  %v337_v33 = vstv %s1717_s2  ;;  %s1748_s27 = sld [smem:[#allocation2 + $0x81]]  ;;  %v391_v41 = vrot.slane %v384_v31, 2  ;;  %v439_v50 = vperm.slane %v431_v21, 1 }
  0x69   : > { %v325_v36 = vadd.f32 %v324_v28, %v318_v24  ;;  %v338_v37 = vmul.f32 %v337_v33, %v1715_v8  ;;  %v344_v38 = vstv %s1723_s0  ;;  %s1752_s7 = sld [smem:[#allocation2 + $0x101]]  ;;  %v393_v47 = vsel %vm392_vm0, %v381_v26, %v389_v34 }
  0x6a   : > { %v351_v40 = vstv %s1729_s22  ;;  %s1755_s5 = sld [smem:[#allocation2 + $0x181]]  ;;  %v345_v45 = vmul.f32 %v344_v38, %v1719_v9  ;;  %v440_v51 = vperm.slane %v432_v35, 1  ;;  %v395_v54 = vsel %vm394_vm1, %v390_v39, %v391_v41 }
  0x6b   : > { %v332_v44 = vadd.f32 %v331_v32, %v325_v36  ;;  %v358_v46 = vstv %s1732_s20  ;;  %s1760_s21 = sld [smem:[#allocation2 + $0x201]]  ;;  %v352_v48 = vmul.f32 %v351_v40, %v1721_v10  ;;  %v441_v58 = vperm.slane %v433_v42, 1 }
  0x6c   : > { %v359_v49 = vmul.f32 %v358_v46, %v1725_v14  ;;  %s1764_s6 = sld [smem:[#allocation2 + $0x281]]  ;;  %v365_v53 = vstv %s1740_s28  ;;  %v442_v59 = vperm.slane %v434_v43, 1  ;;  %v447_v63 = vrot.slane %v440_v51, 6 }
  0x6d   : > { %v339_v52 = vadd.f32 %v338_v37, %v332_v44  ;;  %v401_v55 = vstv %s1744_s29  ;;  %s1769_s25 = sld [smem:[#allocation2 + $0x301]]  ;;  %v448_v3 = vrot.slane %v441_v58, 4  ;;  %v1796_v20 = vunpack.c.l.bf16 %v1780_v0 }
  0x6e   : > { %v402_v56 = vmul.f32 %v401_v55, %v1707_v5  ;;  %v404_v57 = vstv %s1748_s27  ;;  %s1773_s8 = sld [smem:[#allocation2 + $0x381]]  ;;  %v449_v4 = vrot.slane %v442_v59, 2  ;;  %v450_v18 = vsel %vm392_vm0, %v439_v50, %v447_v63 }
  0x6f   : > { %v346_v60 = vadd.f32 %v345_v45, %v339_v52  ;;  %v405_v61 = vmul.f32 %v404_v57, %v1709_v6  ;;  %v408_v62 = vstv %s1752_s7  ;;  %s1777_s12 = sld [smem:[#allocation2 + $0x2]]  ;;  %v366_v21 = vmul.f32 %v365_v53, %v1727_v15 }
  0x70   : > { %v409_v1 = vmul.f32 %v408_v62, %v1711_v7  ;;  %v412_v2 = vstv %s1755_s5  ;;  %s1784_s23 = sld [smem:[#allocation2 + $0x82]]  ;;  %v451_v19 = vsel %vm394_vm1, %v448_v3, %v449_v4  ;;  %v397_v28 = vsel %vm396_vm2, %v393_v47, %v395_v54 }
  0x71   : > { %v353_v11 = vadd.f32 %v352_v48, %v346_v60  ;;  %v406_v12 = vadd.f32 %v405_v61, %v402_v56  ;;  %v413_v13 = vmul.f32 %v412_v2, %v1715_v8  ;;  %v416_v16 = vstv %s1760_s21  ;;  %s1788_s9 = sld [smem:[#allocation2 + $0x102]] }
  0x72   : > { %v420_v17 = vstv %s1764_s6  ;;  %s1793_s24 = sld [smem:[#allocation2 + $0x182]]  ;;  %v417_v25 = vmul.f32 %v416_v16, %v1719_v9  ;;  %v1810_v33 = vsel %vm396_vm2, %v450_v18, %v451_v19  ;;  %v492_v37 = vperm.slane %v1734_v22, 6 }
  0x73   : > { %v410_v24 = vadd.f32 %v409_v1, %v406_v12  ;;  %v424_v26 = vstv %s1769_s25  ;;  %s1801_s2 = sld [smem:[#allocation2 + $0x202]]  ;;  %v360_v27 = vadd.f32 %v359_v49, %v353_v11  ;;  %v421_v29 = vmul.f32 %v420_v17, %v1721_v10 }
  0x74   : > { %v425_v30 = vmul.f32 %v424_v26, %v1725_v14  ;;  %s1806_s0 = sld [smem:[#allocation2 + $0x282]]  ;;  %v428_v32 = vstv %s1773_s8  ;;  %v493_v38 = vperm.slane %v1736_v23, 2  ;;  %v491_v42 = vperm.slane %v1734_v22, 2 }
  0x75   : > { %v414_v31 = vadd.f32 %v413_v13, %v410_v24  ;;  %v456_v34 = vstv %s1777_s12  ;;  %s1813_s22 = sld [smem:[#allocation2 + $0x302]]  ;;  %v367_v43 = vadd.f32 %v366_v21, %v360_v27  ;;  %v494_v46 = vperm.slane %v1736_v23, 6 }
  0x76   : > { %v457_v35 = vmul.f32 %v456_v34, %v1707_v5  ;;  %v459_v36 = vstv %s1784_s23  ;;  %s1817_s20 = sld [smem:[#allocation2 + $0x382]]  ;;  %v429_v51 = vmul.f32 %v428_v32, %v1727_v15  ;;  %v500_v53 = vperm.slane %v492_v37, 2 }
  0x77   : > { %v418_v39 = vadd.f32 %v417_v25, %v414_v31  ;;  %v460_v40 = vmul.f32 %v459_v36, %v1709_v6  ;;  %v463_v41 = vstv %s1788_s9  ;;  %s1824_s28 = sld [smem:[#allocation2 + $0x3]]  ;;  %v501_v54 = vperm.slane %v493_v38, 2  ;;  %s309_s9 = scalar_lea.vmem [#allocation10], %s1187_s11 }
  0x78   : > { %v464_v44 = vmul.f32 %v463_v41, %v1711_v7  ;;  %v467_v45 = vstv %s1793_s24  ;;  %s1829_s29 = sld [smem:[#allocation2 + $0x83]]  ;;  %v1843_v59 = vsub.f32 %v367_v43, %v397_v28  ;;  %v499_v60 = vperm.slane %v491_v42, 2  ;;  %s1044_s24 = sshll.u32 %s309_s9, 4  ;;  %s1045_s24 = int_to_ptr.vmem [resolvable:$true] %s1044_s24 }
  0x79   : > { %v422_v47 = vadd.f32 %v421_v29, %v418_v39  ;;  %v461_v48 = vadd.f32 %v460_v40, %v457_v35  ;;  %v468_v49 = vmul.f32 %v467_v45, %v1715_v8  ;;  %v471_v50 = vstv %s1801_s2  ;;  %s1833_s27 = sld [smem:[#allocation2 + $0x103]]  ;;  %s1441_s11 = scalar_lea.hbm %s2013_s4, 16 }
  0x7a   : > { %v475_v52 = vstv %s1806_s0  ;;  %s1837_s7 = sld [smem:[#allocation2 + $0x183]]  ;;  %v472_v57 = vmul.f32 %v471_v50, %v1719_v9  ;;  %v502_v61 = vperm.slane %v494_v46, 2  ;;  %v507_v62 = vrot.slane %v500_v53, 6 }
  0x7b   : > { %v426_v55 = vadd.f32 %v425_v30, %v422_v47  ;;  %v465_v56 = vadd.f32 %v464_v44, %v461_v48  ;;  %v479_v58 = vstv %s1813_s22  ;;  %s1841_s5 = sld [smem:[#allocation2 + $0x203]]  ;;  %v476_v1 = vmul.f32 %v475_v52, %v1721_v10 }
  0x7c   : > { %s1845_s21 = sld [smem:[#allocation2 + $0x283]]  ;;  %v483_v2 = vstv %s1817_s20  ;;  %v508_v3 = vrot.slane %v501_v54, 4  ;;  %v480_v4 = vmul.f32 %v479_v58, %v1725_v14  ;;  %v509_v11 = vrot.slane %v502_v61, 2 }
  0x7d   : > { %v469_v63 = vadd.f32 %v468_v49, %v465_v56  ;;  %s1849_s6 = sld [smem:[#allocation2 + $0x303]]  ;;  %v516_v12 = vstv %s1824_s28  ;;  %v430_v16 = vadd.f32 %v429_v51, %v426_v55  ;;  %v484_v21 = vmul.f32 %v483_v2, %v1727_v15 }
  0x7e   : > { %v519_v13 = vstv %s1829_s29  ;;  %s1854_s25 = sld [smem:[#allocation2 + $0x383]]  ;;  %v517_v18 = vmul.f32 %v516_v12, %v1707_v5  ;;  %v510_v24 = vsel %vm392_vm0, %v499_v60, %v507_v62  ;;  %v511_v28 = vsel %vm394_vm1, %v508_v3, %v509_v11  ;;  %v624_v3 = vld [vmem:[%s1701_s26] sm:$0xaa] }
  0x7f   : > { %v473_v17 = vadd.f32 %v472_v57, %v469_v63  ;;  %v520_v19 = vmul.f32 %v519_v13, %v1709_v6  ;;  %v523_v25 = vstv %s1833_s27  ;;  %v547_v6 = vperm.slane %v1734_v22, 7 }
  0x80   : > { %v527_v26 = vstv %s1837_s7  ;;  %v524_v30 = vmul.f32 %v523_v25, %v1711_v7  ;;  %v546_v37 = vperm.slane %v1734_v22, 3  ;;  %v1871_v38 = vsub.f32 %v430_v16, %v1810_v33 }
  0x81   : > { %v477_v27 = vadd.f32 %v476_v1, %v473_v17  ;;  %v521_v29 = vadd.f32 %v520_v19, %v517_v18  ;;  %v528_v31 = vmul.f32 %v527_v26, %v1715_v8  ;;  %v531_v32 = vstv %s1841_s5 }
  0x82   : > { %v535_v5 = vstv %s1845_s21  ;;  %v532_v36 = vmul.f32 %v531_v32, %v1719_v9  ;;  %v512_v39 = vsel %vm396_vm2, %v510_v24, %v511_v28  ;;  %v548_v7 = vperm.slane %v1736_v23, 3 }
  0x83   : > { %v481_v34 = vadd.f32 %v480_v4, %v477_v27  ;;  %v525_v35 = vadd.f32 %v524_v30, %v521_v29  ;;  %v549_v40 = vperm.slane %v1736_v23, 7  ;;  %v536_v41 = vmul.f32 %v535_v5, %v1721_v10 }
  0x84   : > { %v539_v42 = vstv %s1849_s6  ;;  %v543_v43 = vstv %s1854_s25  ;;  %v555_v45 = vperm.slane %v547_v6, 3  ;;  %v556_v46 = vperm.slane %v548_v7, 3 }
  0x85   : > { %v529_v8 = vadd.f32 %v528_v31, %v525_v35  ;;  %v485_v44 = vadd.f32 %v484_v21, %v481_v34  ;;  %v557_v9 = vperm.slane %v549_v40, 3  ;;  %v554_v22 = vperm.slane %v546_v37, 3 }
  0x86   : > { %v572_v33 = vunpack.c.h.bf16 %v1780_v0  ;;  %v575_v48 = vperm.slane %v1796_v20, 0  ;;  %v540_v49 = vmul.f32 %v539_v42, %v1725_v14  ;;  %v562_v50 = vrot.slane %v555_v45, 6 }
  0x87   : > { %v533_v47 = vadd.f32 %v532_v36, %v529_v8  ;;  %v563_v51 = vrot.slane %v556_v46, 4  ;;  %v576_v23 = vperm.slane %v1796_v20, 4  ;;  %v564_v10 = vrot.slane %v557_v9, 2 }
  0x88   : > { %v577_v53 = vperm.slane %v572_v33, 0  ;;  %v578_v54 = vperm.slane %v572_v33, 4  ;;  %v1883_v55 = vsub.f32 %v485_v44, %v512_v39  ;;  %v544_v56 = vmul.f32 %v543_v43, %v1727_v15  ;;  %v1228_v43 = vld [vmem:[%s1701_s26 + $0x8] sm:$0x55] }
  0x89   : > { %v537_v52 = vadd.f32 %v536_v41, %v533_v47  ;;  %v584_v57 = vperm.slane %v576_v23, 0  ;;  %v599_v0 = vperm.slane %v1796_v20, 1  ;;  %v565_v58 = vsel %vm392_vm0, %v554_v22, %v562_v50 }
  0x8a   : > { %v583_v60 = vperm.slane %v575_v48, 0  ;;  %v585_v14 = vperm.slane %v577_v53, 0  ;;  %v586_v61 = vperm.slane %v578_v54, 0  ;;  %v600_v63 = vperm.slane %v1796_v20, 5 }
  0x8b   : > { %v591_v62 = vrot.slane %v584_v57, 6  ;;  %v601_v1 = vperm.slane %v572_v33, 1  ;;  %v602_v2 = vperm.slane %v572_v33, 5  ;;  %v541_v4 = vadd.f32 %v540_v49, %v537_v52 }
  0x8c   : > { %v566_v11 = vsel %vm394_vm1, %v563_v51, %v564_v10  ;;  %v592_v12 = vrot.slane %v585_v14, 4  ;;  %v593_v13 = vrot.slane %v586_v61, 2  ;;  %v607_v15 = vperm.slane %v599_v0, 1 }
  0x8d   : > { %v608_v16 = vperm.slane %v600_v63, 1  ;;  %v609_v17 = vperm.slane %v601_v1, 1  ;;  %v610_v18 = vperm.slane %v602_v2, 1  ;;  %v594_v19 = vsel %vm392_vm0, %v583_v60, %v591_v62  ;;  %v1229_v60 = vld [vmem:[%s1701_s26 + $0x8] sm:$0xaa] }
  0x8e   : > { %v595_v21 = vsel %vm394_vm1, %v592_v12, %v593_v13  ;;  %v625_v24 = vunpack.c.l.bf16 %v624_v3  ;;  %v626_v25 = vunpack.c.h.bf16 %v624_v3  ;;  %v567_v20 = vsel %vm396_vm2, %v565_v58, %v566_v11 }
  0x8f   : > { %v615_v26 = vrot.slane %v608_v16, 6  ;;  %v616_v27 = vrot.slane %v609_v17, 4  ;;  %v617_v28 = vrot.slane %v610_v18, 2  ;;  %v545_v29 = vadd.f32 %v544_v56, %v541_v4 }
  0x90   : > { %v629_v30 = vperm.slane %v625_v24, 2  ;;  %v630_v31 = vperm.slane %v625_v24, 6  ;;  %v631_v32 = vperm.slane %v626_v25, 2  ;;  %v596_v5 = vsel %vm396_vm2, %v594_v19, %v595_v21 }
  0x91   : > { %v618_v6 = vsel %vm392_vm0, %v607_v15, %v615_v26  ;;  %v619_v34 = vsel %vm394_vm1, %v616_v27, %v617_v28  ;;  %v632_v35 = vperm.slane %v626_v25, 6  ;;  %v654_v8 = vperm.slane %v625_v24, 3 }
  0x92   : > { %v620_v36 = vsel %vm396_vm2, %v618_v6, %v619_v34  ;;  %v637_v37 = vperm.slane %v629_v30, 2  ;;  %v638_v39 = vperm.slane %v630_v31, 2  ;;  %v639_v7 = vperm.slane %v631_v32, 2 }
  0x93   : > { %v640_v40 = vperm.slane %v632_v35, 2  ;;  %v655_v41 = vperm.slane %v625_v24, 7  ;;  %v656_v42 = vperm.slane %v626_v25, 3  ;;  %v598_v44 = vmul.f32 %v596_v5, %v1843_v59 }
  0x94   : > { %v645_v45 = vrot.slane %v638_v39, 6  ;;  %v646_v46 = vrot.slane %v639_v7, 4  ;;  %v657_v9 = vperm.slane %v626_v25, 7  ;;  %v622_v47 = vmul.f32 %v620_v36, %v1871_v38 }
  0x95   : > { %v647_v22 = vrot.slane %v640_v40, 2  ;;  %v663_v33 = vperm.slane %v655_v41, 3  ;;  %v664_v48 = vperm.slane %v656_v42, 3  ;;  %v682_v51 = vunpack.c.l.bf16 %v1228_v43 }
  0x96   : > { %v648_v49 = vsel %vm392_vm0, %v637_v37, %v645_v45  ;;  %v665_v50 = vperm.slane %v657_v9, 3  ;;  %v683_v23 = vunpack.c.h.bf16 %v1228_v43  ;;  %v662_v10 = vperm.slane %v654_v8, 3 }
  0x97   : > { %v649_v52 = vsel %vm394_vm1, %v646_v46, %v647_v22  ;;  %v670_v53 = vrot.slane %v663_v33, 6  ;;  %v671_v54 = vrot.slane %v664_v48, 4  ;;  %v686_v0 = vperm.slane %v682_v51, 0 }
  0x98   : > { %v650_v56 = vsel %vm396_vm2, %v648_v49, %v649_v52  ;;  %v672_v57 = vrot.slane %v665_v50, 2  ;;  %v687_v58 = vperm.slane %v682_v51, 4  ;;  %v623_v14 = vadd.f32 %v622_v47, %v598_v44  ;;  %v1230_v49 = vld [vmem:[%s1701_s26 + $0x10] sm:$0x55] }
  0x99   : > { %v652_v61 = vmul.f32 %v650_v56, %v1883_v55  ;;  %v688_v62 = vperm.slane %v683_v23, 0  ;;  %v689_v63 = vperm.slane %v683_v23, 4  ;;  %v1906_v1 = vsub.f32 %v545_v29, %v567_v20 }
  0x9a   : > { %v694_v2 = vperm.slane %v686_v0, 0  ;;  %v695_v3 = vperm.slane %v687_v58, 0  ;;  %v710_v4 = vperm.slane %v682_v51, 1  ;;  %v673_v11 = vsel %vm392_vm0, %v662_v10, %v670_v53 }
  0x9b   : > { %v696_v12 = vperm.slane %v688_v62, 0  ;;  %v697_v13 = vperm.slane %v689_v63, 0  ;;  %v736_v15 = vunpack.c.l.bf16 %v1229_v60  ;;  %v674_v16 = vsel %vm394_vm1, %v671_v54, %v672_v57 }
  0x9c   : > { %v702_v17 = vrot.slane %v695_v3, 6  ;;  %v711_v18 = vperm.slane %v682_v51, 5  ;;  %v712_v19 = vperm.slane %v683_v23, 1  ;;  %v1910_v21 = vadd.f32 %v652_v61, %v623_v14 }
  0x9d   : > { %v703_v24 = vrot.slane %v696_v12, 4  ;;  %v704_v25 = vrot.slane %v697_v13, 2  ;;  %v713_v26 = vperm.slane %v683_v23, 5  ;;  %v718_v27 = vperm.slane %v710_v4, 1 }
  0x9e   : > { %v705_v20 = vsel %vm392_vm0, %v694_v2, %v702_v17  ;;  %v719_v28 = vperm.slane %v711_v18, 1  ;;  %v720_v29 = vperm.slane %v712_v19, 1  ;;  %v737_v32 = vunpack.c.h.bf16 %v1229_v60 }
  0x9f   : > { %v706_v30 = vsel %vm394_vm1, %v703_v24, %v704_v25  ;;  %v721_v31 = vperm.slane %v713_v26, 1  ;;  %v740_v5 = vperm.slane %v736_v15, 2  ;;  %v675_v6 = vsel %vm396_vm2, %v673_v11, %v674_v16 }
  0xa0   : > { %v707_v34 = vsel %vm396_vm2, %v705_v20, %v706_v30  ;;  %v726_v35 = vrot.slane %v719_v28, 6  ;;  %v727_v36 = vrot.slane %v720_v29, 4  ;;  %v741_v7 = vperm.slane %v736_v15, 6  ;;  %v1231_v28 = vld [vmem:[%s1701_s26 + $0x10] sm:$0xaa] }
  0xa1   : > { %v709_v37 = vmul.f32 %v707_v34, %v1843_v59  ;;  %v728_v39 = vrot.slane %v721_v31, 2  ;;  %v742_v40 = vperm.slane %v737_v32, 2  ;;  %v743_v41 = vperm.slane %v737_v32, 6 }
  0xa2   : > { %v729_v8 = vsel %vm392_vm0, %v718_v27, %v726_v35  ;;  %v748_v42 = vperm.slane %v740_v5, 2  ;;  %v765_v43 = vperm.slane %v736_v15, 3  ;;  %v749_v45 = vperm.slane %v741_v7, 2 }
  0xa3   : > { %v730_v44 = vsel %vm394_vm1, %v727_v36, %v728_v39  ;;  %v750_v46 = vperm.slane %v742_v40, 2  ;;  %v766_v9 = vperm.slane %v736_v15, 7  ;;  %v751_v22 = vperm.slane %v743_v41, 2 }
  0xa4   : > { %v731_v47 = vsel %vm396_vm2, %v729_v8, %v730_v44  ;;  %v767_v33 = vperm.slane %v737_v32, 3  ;;  %v768_v48 = vperm.slane %v737_v32, 7  ;;  %v756_v51 = vrot.slane %v749_v45, 6 }
  0xa5   : > { %v733_v50 = vmul.f32 %v731_v47, %v1871_v38  ;;  %v757_v23 = vrot.slane %v750_v46, 4  ;;  %v773_v52 = vperm.slane %v765_v43, 3  ;;  %v758_v10 = vrot.slane %v751_v22, 2 }
  0xa6   : > { %v774_v53 = vperm.slane %v766_v9, 3  ;;  %v775_v54 = vperm.slane %v767_v33, 3  ;;  %v776_v56 = vperm.slane %v768_v48, 3  ;;  %v759_v0 = vsel %vm392_vm0, %v748_v42, %v756_v51 }
  0xa7   : > { %v734_v57 = vadd.f32 %v733_v50, %v709_v37  ;;  %v794_v58 = vunpack.c.l.bf16 %v1230_v49  ;;  %v795_v60 = vunpack.c.h.bf16 %v1230_v49  ;;  %v760_v14 = vsel %vm394_vm1, %v757_v23, %v758_v10 }
  0xa8   : > { %v781_v61 = vrot.slane %v774_v53, 6  ;;  %v782_v62 = vrot.slane %v775_v54, 4  ;;  %v783_v63 = vrot.slane %v776_v56, 2  ;;  %v761_v2 = vsel %vm396_vm2, %v759_v0, %v760_v14 }
  0xa9   : > { %v798_v3 = vperm.slane %v794_v58, 0  ;;  %v799_v4 = vperm.slane %v794_v58, 4  ;;  %v800_v11 = vperm.slane %v795_v60, 0  ;;  %v763_v12 = vmul.f32 %v761_v2, %v1883_v55 }
  0xaa   : > { %v784_v13 = vsel %vm392_vm0, %v773_v52, %v781_v61  ;;  %v785_v15 = vsel %vm394_vm1, %v782_v62, %v783_v63  ;;  %v801_v16 = vperm.slane %v795_v60, 4  ;;  %v677_v25 = vmul.f32 %v675_v6, %v1906_v1 }
  0xab   : > { %v786_v17 = vsel %vm396_vm2, %v784_v13, %v785_v15  ;;  %v806_v18 = vperm.slane %v798_v3, 0  ;;  %v807_v19 = vperm.slane %v799_v4, 0  ;;  %v808_v24 = vperm.slane %v800_v11, 0 }
  0xac   : > { %v764_v26 = vadd.f32 %v763_v12, %v734_v57  ;;  %v809_v20 = vperm.slane %v801_v16, 0  ;;  %v822_v27 = vperm.slane %v794_v58, 1  ;;  %v823_v31 = vperm.slane %v794_v58, 5  ;;  %v1232_v57 = vld [vmem:[%s1701_s26 + $0x18] sm:$0x55] }
  0xad   : > { %v814_v29 = vrot.slane %v807_v19, 6  ;;  %v815_v30 = vrot.slane %v808_v24, 4  ;;  %v824_v32 = vperm.slane %v795_v60, 1  ;;  %v788_v5 = vmul.f32 %v786_v17, %v1906_v1 }
  0xae   : > { %v816_v34 = vrot.slane %v809_v20, 2  ;;  %v825_v35 = vperm.slane %v795_v60, 5  ;;  %v830_v36 = vperm.slane %v822_v27, 1  ;;  %v831_v39 = vperm.slane %v823_v31, 1 }
  0xaf   : > { %v817_v37 = vsel %vm392_vm0, %v806_v18, %v814_v29  ;;  %v832_v7 = vperm.slane %v824_v32, 1  ;;  %v848_v40 = vunpack.c.l.bf16 %v1231_v28  ;;  %v849_v41 = vunpack.c.h.bf16 %v1231_v28 }
  0xb0   : > { %v818_v6 = vsel %vm394_vm1, %v815_v30, %v816_v34  ;;  %v833_v8 = vperm.slane %v825_v35, 1  ;;  %v678_v42 = vadd.f32 %v677_v25, %v1910_v21  ;;  %v838_v43 = vrot.slane %v831_v39, 6 }
  0xb1   : > { %v839_v44 = vrot.slane %v832_v7, 4  ;;  %v852_v45 = vperm.slane %v848_v40, 2  ;;  %v789_v46 = vadd.f32 %v788_v5, %v764_v26  ;;  %v819_v9 = vsel %vm396_vm2, %v817_v37, %v818_v6  ;;  %v1233_v6 = vld [vmem:[%s1701_s26 + $0x18] sm:$0xaa]  ;;  %s1241_s26 = sshll.u32 %s1609_s13, 3  ;;  %s1031_s13 = scalar_lea.sflag [#allocation4], %s1685_s14 }
  0xb2   : > { %v840_v47 = vrot.slane %v833_v8, 2  ;;  %v853_v22 = vperm.slane %v848_v40, 6  ;;  %v841_v33 = vsel %vm392_vm0, %v830_v36, %v838_v43  ;;  %v854_v48 = vperm.slane %v849_v41, 2  ;;  %s1042_s23 = scalar_lea.hbm %s2013_s4, %s1241_s26 }
  0xb3   : > { %v855_v49 = vperm.slane %v849_v41, 6  ;;  %v860_v50 = vperm.slane %v852_v45, 2  ;;  %v877_v52 = vperm.slane %v848_v40, 3  ;;  %v878_v10 = vperm.slane %v848_v40, 7  ;;  %s1046_s2 = sshll.u32 %s1042_s23, 4  ;;  %s1047_s2 = int_to_ptr.hbm [resolvable:$true] %s1046_s2 }
  0xb4   : > { %v842_v51 = vsel %vm394_vm1, %v839_v44, %v840_v47  ;;  %v861_v23 = vperm.slane %v853_v22, 2  ;;  %v862_v53 = vperm.slane %v854_v48, 2  ;;  %v879_v56 = vperm.slane %v849_v41, 3  ;;  %s1435_s0 = sshra.s32 %s1047_s2, 4  ;;  %s1436_s0 = int_to_ptr.hbm [resolvable:$true] %s1435_s0 }
  0xb5   : > { %v843_v21 = vsel %vm396_vm2, %v841_v33, %v842_v51  ;;  %v863_v54 = vperm.slane %v855_v49, 2  ;;  %v821_v0 = vmul.f32 %v819_v9, %v1843_v59  ;;  %v880_v60 = vperm.slane %v849_v41, 7  ;;  %s1437_s22 = scalar_lea.hbm %s1436_s0, 8  ;;  %p1442_p1 = scmp.lt.s32.totalorder %s1436_s0, %s2013_s4 }
  0xb6   : > { %v868_v58 = vrot.slane %v861_v23, 6  ;;  %v885_v14 = vperm.slane %v877_v52, 3  ;;  %v869_v61 = vrot.slane %v862_v53, 4  ;;  %v886_v63 = vperm.slane %v878_v10, 3  ;;  %p1438_p6 = scmp.ne.s32.totalorder %s1436_s0, %s1437_s22  ;;  %p1443_p5 = scmp.lt.s32.totalorder %s1441_s11, %s1437_s22 }
  0xb7   : > { %v870_v62 = vrot.slane %v863_v54, 2  ;;  %v887_v2 = vperm.slane %v879_v56, 3  ;;  %v845_v3 = vmul.f32 %v843_v21, %v1871_v38  ;;  %v888_v11 = vperm.slane %v880_v60, 3 }
  0xb8   : > { %v871_v4 = vsel %vm392_vm0, %v860_v50, %v868_v58  ;;  %v906_v12 = vunpack.c.l.bf16 %v1232_v57  ;;  %v893_v15 = vrot.slane %v886_v63, 6  ;;  %v907_v17 = vunpack.c.h.bf16 %v1232_v57  ;;  %p1439_p4 = pnand %p1438_p6, %p1626_p11  ;;  %p1444_p7 = por %p1443_p5, %p1442_p1 }
  0xb9   : > { %v872_v13 = vsel %vm394_vm1, %v869_v61, %v870_v62  ;;  %v894_v16 = vrot.slane %v887_v2, 4  ;;  %v1945_v18 = vmul.f32 %v678_v42, %v1843_v59  ;;  %v895_v19 = vrot.slane %v888_v11, 2 }
  0xba   : > { %v910_v24 = vperm.slane %v906_v12, 0  ;;  %v911_v25 = vperm.slane %v906_v12, 4  ;;  %v873_v26 = vsel %vm396_vm2, %v871_v4, %v872_v13  ;;  %v896_v20 = vsel %vm392_vm0, %v885_v14, %v893_v15  ;;  %p1440_p10 = pneg %p1439_p4 }
  0xbb   : > { %v912_v27 = vperm.slane %v907_v17, 0  ;;  %v913_v28 = vperm.slane %v907_v17, 4  ;;  %v897_v29 = vsel %vm394_vm1, %v894_v16, %v895_v19  ;;  %v934_v32 = vperm.slane %v906_v12, 1 }
  0xbc   : > { %v918_v30 = vperm.slane %v910_v24, 0  ;;  %v919_v31 = vperm.slane %v911_v25, 0  ;;  %v790_v5 = vmul.f32 %v789_v46, %v1871_v38  ;;  %v846_v34 = vadd.f32 %v845_v3, %v821_v0  ;;  %p1445_p3 = pnand %p1444_p7, %p1440_p10 }
  0xbd   : > { %v920_v35 = vperm.slane %v912_v27, 0  ;;  %v921_v36 = vperm.slane %v913_v28, 0  ;;  %v875_v37 = vmul.f32 %v873_v26, %v1883_v55  ;;  %v935_v7 = vperm.slane %v906_v12, 5 }
  0xbe   : > { %v926_v39 = vrot.slane %v919_v31, 6  ;;  %v936_v40 = vperm.slane %v907_v17, 1  ;;  %v898_v8 = vsel %vm396_vm2, %v896_v20, %v897_v29  ;;  %v937_v43 = vperm.slane %v907_v17, 5 }
  0xbf   : > { %v927_v41 = vrot.slane %v920_v35, 4  ;;  %v928_v42 = vrot.slane %v921_v36, 2  ;;  %v942_v45 = vperm.slane %v934_v32, 1  ;;  %v943_v9 = vperm.slane %v935_v7, 1 }
  0xc0   : > { %v929_v44 = vsel %vm392_vm0, %v918_v30, %v926_v39  ;;  %v944_v47 = vperm.slane %v936_v40, 1  ;;  %v945_v22 = vperm.slane %v937_v43, 1  ;;  %v960_v33 = vunpack.c.l.bf16 %v1233_v6 }
  0xc1   : > { %v930_v46 = vsel %vm394_vm1, %v927_v41, %v928_v42  ;;  %v961_v48 = vunpack.c.h.bf16 %v1233_v6  ;;  %v876_v49 = vadd.f32 %v875_v37, %v846_v34  ;;  %v950_v51 = vrot.slane %v943_v9, 6 }
  0xc2   : > { %v931_v50 = vsel %vm396_vm2, %v929_v44, %v930_v46  ;;  %v951_v23 = vrot.slane %v944_v47, 4  ;;  %v900_v52 = vmul.f32 %v898_v8, %v1906_v1  ;;  %v952_v10 = vrot.slane %v945_v22, 2 }
  0xc3   : > { %v964_v21 = vperm.slane %v960_v33, 2  ;;  %v965_v53 = vperm.slane %v960_v33, 6  ;;  %v933_v54 = vmul.f32 %v931_v50, %v1843_v59  ;;  %v953_v56 = vsel %vm392_vm0, %v942_v45, %v950_v51 }
  0xc4   : > { %v966_v57 = vperm.slane %v961_v48, 2  ;;  %v967_v0 = vperm.slane %v961_v48, 6  ;;  %v954_v58 = vsel %vm394_vm1, %v951_v23, %v952_v10  ;;  %v989_v61 = vperm.slane %v960_v33, 3 }
  0xc5   : > { %v972_v60 = vperm.slane %v964_v21, 2  ;;  %v973_v14 = vperm.slane %v965_v53, 2  ;;  %v955_v62 = vsel %vm396_vm2, %v953_v56, %v954_v58  ;;  %v990_v3 = vperm.slane %v960_v33, 7 }
  0xc6   : > { %v974_v63 = vperm.slane %v966_v57, 2  ;;  %v975_v2 = vperm.slane %v967_v0, 2  ;;  %v957_v4 = vmul.f32 %v955_v62, %v1871_v38  ;;  %v991_v12 = vperm.slane %v961_v48, 3 }
  0xc7   : > { %v980_v11 = vrot.slane %v973_v14, 6  ;;  %v992_v13 = vperm.slane %v961_v48, 7  ;;  %v997_v16 = vperm.slane %v989_v61, 3  ;;  %v998_v17 = vperm.slane %v990_v3, 3 }
  0xc8   : > { %v981_v59 = vrot.slane %v974_v63, 4  ;;  %v982_v15 = vrot.slane %v975_v2, 2  ;;  %v901_v19 = vadd.f32 %v900_v52, %v876_v49  ;;  %v999_v25 = vperm.slane %v991_v12, 3 }
  0xc9   : > { %v983_v24 = vsel %vm392_vm0, %v972_v60, %v980_v11  ;;  %v1000_v26 = vperm.slane %v992_v13, 3  ;;  %v958_v20 = vadd.f32 %v957_v4, %v933_v54  ;;  %v1005_v28 = vrot.slane %v998_v17, 6 }
  0xca   : > { %v984_v27 = vsel %vm394_vm1, %v981_v59, %v982_v15  ;;  %v1006_v30 = vrot.slane %v999_v25, 4  ;;  %v791_v34 = vadd.f32 %v790_v5, %v1945_v18  ;;  %v902_v35 = vmul.f32 %v901_v19, %v1883_v55 }
  0xcb   : > { %v985_v29 = vsel %vm396_vm2, %v983_v24, %v984_v27  ;;  %v1007_v38 = vrot.slane %v1000_v26, 2  ;;  %v1008_v32 = vsel %vm392_vm0, %v997_v16, %v1005_v28 }
  0xcc   : > { %v987_v31 = vmul.f32 %v985_v29, %v1883_v55  ;;  %v903_v40 = vadd.f32 %v902_v35, %v791_v34 }
  0xcd   : > { %v1009_v36 = vsel %vm394_vm1, %v1006_v30, %v1007_v38 }
  0xce   : > { %v988_v37 = vadd.f32 %v987_v31, %v958_v20  ;;  %v1010_v39 = vsel %vm396_vm2, %v1008_v32, %v1009_v36 }
  0xcf   : > { %v1012_v7 = vmul.f32 %v1010_v39, %v1906_v1 }
  0xd1   : > { %v1013_v6 = vadd.f32 %v1012_v7, %v988_v37 }
  0xd3   : > { %v1014_v8 = vmul.f32 %v1013_v6, %v1906_v1 }
  0xd5   : > { %v1015_v41 = vadd.f32 %v1014_v8, %v903_v40 }
  0xd7   : > { %v1016_v42 = vand.u32 2147483647, %v1015_v41 }
  0xd9   : > { %1314 = vrsqrt.f32 %v1016_v42  ;;  %vm1024_vm3 = vcmp.eq.f32.partialorder %v1016_v42, inf  ;;  %v1027_v9 = vand.u32 2147483648, %v1016_v42  ;;  %vm1026_vm4 = vcmp.eq.f32.partialorder %v1016_v42, 0.0 }
  0xdf   : > { %v1315_v43 = vpop.eup %1314 }
  0xe0   : > { %v1018_v44 = vmul.f32 %v1315_v43, %v1016_v42 }
  0xe2   : > { %v1019_v18 = vmul.f32 %v1315_v43, %v1018_v44 }
  0xe4   : > { %v1020_v55 = vmul.f32 0.5, %v1019_v18 }
  0xe6   : > { %v1021_v5 = vsub.f32 1.5, %v1020_v55 }
  0xe8   : > { %v1022_v45 = vmul.f32 %v1315_v43, %v1021_v5 }
  0xea   : > { %v1023_v1 = vmul.f32 %v1022_v45, %v1016_v42 }
  0xec   : > { %v1025_v47 = vsel %vm1024_vm3, %v1016_v42, %v1023_v1 }
  0xed   : > { %v1028_v46 = vsel %vm1026_vm4, %v1027_v9, %v1025_v47 }
  0xee   : > { %1029 = vst [vmem:[%s309_s9] sm:$0xff] %v1028_v46 }
  0xef   : > { %1448 = shalt.err (!%p1445_p3)
}
  0xf0   : > { %1252 = dma.vmem_to_hbm [thread:$0]  (%p1626_p11), %s1045_s24, 128, %s1047_s2, %s1031_s13  }
  0xf1 PF: > { %s1058_s14 = sand.u32 1, %s1483_s15   ;;  %p2027_p9 = scmp.ge.s32.totalorder %s1495_s18, 2 }
  0xf2   : > { %s1059_s7 = scalar_lea.sflag [#allocation4], %s1058_s14 }
  0xf3   : > { %p1269_p13 = pnand %p2027_p9, %p1630_p12 }
  0xf5   : > { %p1270_p0 = pneg %p1269_p13 }
  0xf7   : > { %1478 = dma.done.wait (%p1270_p0), %s1059_s7, 128  }
  0xf8   : > { %1480 = vsyncadd (%p1270_p0), %s1059_s7, 4294967168  ;;  %s2028_s5 = sld [smem:[#allocation15_spill]]  ;;  %p21_p8 = scmp.ge.s32.totalorder %s1549_s19, 4  }
  0xf9   : > { %s2029_s15 = smov %s1487_s16  ;;  %s2030_s16 = smov %s1491_s17 }
  0xfa   : > { %s2032_s18 = smov %s1549_s19  ;;  %23 = sbr.rel (!%p21_p8) target bundleno = 11 (0xb), region = 120 }
  0xfe   : > { %s2031_s17 = smov %s2028_s5 }
  0xff   :  { %1065 = vsyncpa [#allocation3], 1 }
 0x100   :  { %1067 = vsyncpa [#allocation3 + $0x1], 1 }
 0x101   :  { %1068 = vsyncpa [#allocation8], 1 }
 0x102   :  { %1070 = vsyncpa [#allocation8 + $0x1], 1 }
 0x103   :  { %1071 = vsyncpa [#allocation4], 1 }
 0x104   :  { %1073 = vsyncpa [#allocation4 + $0x1], 1 }
 0x105   :  { %1074 = vsyncpa [#allocation5], 1 }
 0x106   :  { %1076 = vsyncpa [#allocation5 + $0x1], 1 }

</bundles_post_ra>
